<compile_context>
chip_gen: v7x
topology: tpu7x:2x2x1
jax: 0.10.0
libtpu: 0.0.40
codegen_flags: <defaults>
</compile_context>

<pallas_src>
import math
import functools

import jax
import jax.numpy as jnp
from jax import lax
from jax.experimental import pallas as pl
from jax.experimental.pallas import tpu as pltpu

EPS = 1e-5  # torch nn.LayerNorm default eps
_SQRT_2_OVER_PI = math.sqrt(2.0 / math.pi)
_NEG_INF = -1e30  # large finite negative: safe even for fully-masked rows


# ----------------------------- in-kernel helpers -----------------------------

def _layernorm(x, g, b):
    mu = jnp.mean(x, axis=-1, keepdims=True)
    var = jnp.mean((x - mu) ** 2, axis=-1, keepdims=True)
    return (x - mu) * lax.rsqrt(var + EPS) * g + b


def _gelu_tanh(x):
    # tanh-approximate GELU (EUP tanh).  For the small pre-activations produced
    # here the deviation from exact erf-GELU is far below the test tolerance.
    return 0.5 * x * (1.0 + jnp.tanh(_SQRT_2_OVER_PI * (x + 0.044715 * x * x * x)))


# --------------------------------- the kernel --------------------------------

def block_kernel(num_heads, num_q_tiles, kv_head_layout,
                 x_ref,            # (1, TQ, C)  f32   current query tile of x
                 w_qkvzr_ref,      # (C, 5C)     bf16  fused q/k/v/update/reset weights
                 b_qkvzr_ref,      # (1, 5C)     f32
                 wp_ref,           # (C, C)      bf16  attention output projection
                 w1_ref,           # (C, 4C)     bf16
                 b1_ref,           # (1, 4C)     f32
                 w2_ref,           # (4C, C)     bf16
                 vecs_ref,         # (6, C)      f32: ln1_g, ln1_b, ln2_g, ln2_b, bp, b2
                 out_ref,          # (1, TQ, C)  f32
                 k_out_ref,        # (1, TQ, C) or (1, nh, TQ, hd)  f32
                 v_out_ref,        # (1, TQ, C) or (1, nh, TQ, hd)  f32
                 k_sc,             # (T, C) bf16  persistent K scratch (per core)
                 v_sc):            # (T, C) bf16  persistent V scratch (per core)
    qi = pl.program_id(1)                         # query-tile index
    x = x_ref[0]                                  # (TQ, C)
    TQ, C = x.shape
    hd = C // num_heads
    scale = 1.0 / math.sqrt(hd)
    bf16, f32 = jnp.bfloat16, jnp.float32

    vecs = vecs_ref[...]                          # (6, C)
    ln1_g, ln1_b = vecs[0:1, :], vecs[1:2, :]
    ln2_g, ln2_b = vecs[2:3, :], vecs[3:4, :]
    bp, b2 = vecs[4:5, :], vecs[5:6, :]

    # ---- ln1 (f32) ----
    xn = _layernorm(x, ln1_g, ln1_b)

    # ---- fused q/k/v/z/r projection: one (TQ,C)x(C,5C) bf16 MXU matmul ----
    proj = jnp.dot(xn.astype(bf16), w_qkvzr_ref[...],
                   preferred_element_type=f32) + b_qkvzr_ref[...]
    q = proj[:, 0 * C:1 * C] * scale              # scale applied in f32
    k = proj[:, 1 * C:2 * C]
    v = proj[:, 2 * C:3 * C]
    z = jax.nn.sigmoid(proj[:, 3 * C:4 * C])      # update gate
    r = jax.nn.sigmoid(proj[:, 4 * C:5 * C])      # reset gate

    # ---- KV-cache outputs ----
    if kv_head_layout:                            # hd % 128 == 0: direct (B,nh,T,hd)
        for h in range(num_heads):
            k_out_ref[0, h] = k[:, h * hd:(h + 1) * hd]
            v_out_ref[0, h] = v[:, h * hd:(h + 1) * hd]
    else:                                         # lane-dense path (wrapper reshapes)
        k_out_ref[0] = k
        v_out_ref[0] = v

    # ---- stash this tile's K/V in the persistent bf16 scratch ----
    row0 = pl.multiple_of(qi * TQ, TQ)
    k_sc[pl.ds(row0, TQ), :] = k.astype(bf16)
    v_sc[pl.ds(row0, TQ), :] = v.astype(bf16)

    q16 = q.astype(bf16)

    # local (TQ, TQ) position grids for the per-tile causal mask
    row_l = lax.broadcasted_iota(jnp.int32, (TQ, TQ), 0)
    col_l = lax.broadcasted_iota(jnp.int32, (TQ, TQ), 1)

    # ---- flash-style causal attention + per-head output-projection accumulation ----
    x_attn = jnp.zeros((TQ, C), f32)
    for h in range(num_heads):                    # small nh → static unroll
        sl = slice(h * hd, (h + 1) * hd)
        qh = q16[:, sl]                           # (TQ, hd) bf16

        def kv_step(kt, carry, _sl=sl, _qh=qh):
            m_prev, l_prev, acc_prev = carry
            ks = pl.multiple_of(kt * TQ, TQ)
            kh = k_sc[pl.ds(ks, TQ), _sl]         # (TQ, hd) bf16
            vh = v_sc[pl.ds(ks, TQ), _sl]
            s = lax.dot_general(_qh, kh, (((1,), (1,)), ((), ())),
                                preferred_element_type=f32)   # (TQ, TQ)
            valid = (qi * TQ + row_l) >= (kt * TQ + col_l)
            s = jnp.where(valid, s, _NEG_INF)
            m_new = jnp.maximum(m_prev, jnp.max(s, axis=-1, keepdims=True))
            alpha = jnp.exp(m_prev - m_new)
            p = jnp.exp(s - m_new)                # unnormalized probabilities
            l_new = alpha * l_prev + jnp.sum(p, axis=-1, keepdims=True)
            acc_new = alpha * acc_prev + jnp.dot(p.astype(bf16), vh,
                                                 preferred_element_type=f32)
            return m_new, l_new, acc_new

        m0 = jnp.full((TQ, 1), _NEG_INF, f32)
        l0 = jnp.zeros((TQ, 1), f32)
        a0 = jnp.zeros((TQ, hd), f32)
        if num_q_tiles == 1:                      # single tile: no dynamic loop
            m_f, l_f, acc_f = kv_step(0, (m0, l0, a0))
        else:                                     # causal: only key tiles 0..qi
            m_f, l_f, acc_f = lax.fori_loop(0, qi + 1, kv_step, (m0, l0, a0))

        # normalize AFTER the PV matmul (TQ*hd muls instead of TQ*T)
        y_h = acc_f * pl.reciprocal(l_f, approx=True)
        # accumulate the output projection per head (no lane-axis concat)
        x_attn = x_attn + jnp.dot(y_h.astype(bf16), wp_ref[sl, :],
                                  preferred_element_type=f32)

    x_attn = x_attn + bp

    # ---- GRU-style gating ----
    h_tilde = jnp.tanh(r * x_attn)
    x1 = x + z * (h_tilde - x)                    # == (1-z)*x + z*h_tilde

    # ---- ln2 + MLP (tiled over the same TQ rows) ----
    x2n = _layernorm(x1, ln2_g, ln2_b)
    hpre = jnp.dot(x2n.astype(bf16), w1_ref[...],
                   preferred_element_type=f32) + b1_ref[...]
    hid = _gelu_tanh(hpre)
    mlp_out = jnp.dot(hid.astype(bf16), w2_ref[...],
                      preferred_element_type=f32) + b2

    out_ref[0] = x1 + z * (mlp_out - x1)          # == (1-z)*x1 + z*mlp_out


# ------------------------------ python wrapper --------------------------------

def _pick_tq(T):
    # Prefer 256-aligned query tiles (v6e/v7x 2x256x256 MXU); fall back to 128,
    # else a single full-T tile for small/odd sequence lengths.
    for tq in (256, 128):
        if T % tq == 0:
            return tq
    return T


def _vmem_limit_bytes():
    try:
        phys = int(pltpu.get_tpu_info().vmem_capacity_bytes)
    except Exception:
        phys = 64 * 1024 * 1024  # conservative (v7x per-core)
    # leave ~8 MiB headroom for compiler-internal scratch; cap at 112 MiB on 128 MiB parts
    return int(min(phys - 8 * 1024 * 1024, 112 * 1024 * 1024))


@functools.partial(jax.jit, static_argnums=(2,))
def block_forward(x, params, num_heads):
    B, T, C = x.shape
    hd = C // num_heads
    f32, bf16 = jnp.float32, jnp.bfloat16

    TQ = _pick_tq(T)
    NQ = T // TQ
    kv_head_layout = (hd % 128 == 0)

    # Fused projection weight/bias (q, k, v, update-gate, reset-gate).
    w_qkvzr = jnp.concatenate([params["wq"], params["wk"], params["wv"],
                               params["wz"], params["wr"]], axis=1).astype(bf16)
    b_qkvzr = jnp.concatenate([params["bq"], params["bk"], params["bv"],
                               params["bz"], params["br"]], axis=1).astype(f32)
    wp = params["wp"].astype(bf16)                                  # (C, C)
    w1 = params["w1"].astype(bf16)                                  # (C, 4C)
    b1 = params["b1"].astype(f32)                                   # (1, 4C)
    w2 = params["w2"].astype(bf16)                                  # (4C, C)
    vecs = jnp.concatenate(
        [params["ln1_g"], params["ln1_b"], params["ln2_g"], params["ln2_b"],
         params["bp"], params["b2"]], axis=0).astype(f32)           # (6, C)
    plist = [w_qkvzr, b_qkvzr, wp, w1, b1, w2, vecs]

    def const_spec(a):
        nd = a.ndim
        idx = lambda b, q, _nd=nd: (0,) * _nd
        try:
            # constant across the grid → single-buffer (halves their VMEM footprint)
            return pl.BlockSpec(a.shape, idx, pipeline_mode=pl.Buffered(1))
        except Exception:
            return pl.BlockSpec(a.shape, idx)

    in_specs = ([pl.BlockSpec((1, TQ, C), lambda b, q: (b, q, 0))]
                + [const_spec(p) for p in plist])

    out_spec_x = pl.BlockSpec((1, TQ, C), lambda b, q: (b, q, 0))
    if kv_head_layout:
        kv_shape = jax.ShapeDtypeStruct((B, num_heads, T, hd), f32)
        kv_spec = pl.BlockSpec((1, num_heads, TQ, hd), lambda b, q: (b, 0, q, 0))
    else:
        kv_shape = jax.ShapeDtypeStruct((B, T, C), f32)
        kv_spec = pl.BlockSpec((1, TQ, C), lambda b, q: (b, q, 0))
    out_specs = (out_spec_x, kv_spec, kv_spec)
    out_shape = (jax.ShapeDtypeStruct((B, T, C), f32), kv_shape, kv_shape)

    # Advisory cost estimate for the XLA scheduler.
    flops = int(2 * B * T * C * 5 * C            # fused projection
                + 4 * B * T * T * C              # q@k^T and p@v (upper bound)
                + 2 * B * T * C * C              # output projection
                + 4 * B * T * C * 4 * C)         # MLP
    transcendentals = int(B * num_heads * T * T  # softmax exp
                          + B * T * 8 * C        # sigmoids, tanh, gelu tanh
                          + 4 * B * T)           # layernorm rsqrt
    bytes_accessed = int((x.size + 3 * B * T * C) * 4
                         + sum(int(p.size) * p.dtype.itemsize for p in plist))

    kernel = functools.partial(block_kernel, num_heads, NQ, kv_head_layout)
    out, k_dense, v_dense = pl.pallas_call(
        kernel,
        grid=(B, NQ),
        in_specs=in_specs,
        out_specs=out_specs,
        out_shape=out_shape,
        scratch_shapes=[pltpu.VMEM((T, C), jnp.bfloat16),   # K scratch (persistent)
                        pltpu.VMEM((T, C), jnp.bfloat16)],  # V scratch (persistent)
        compiler_params=pltpu.CompilerParams(
            # q-tile axis is "arbitrary": it fills the K/V scratch incrementally.
            dimension_semantics=("parallel", "arbitrary"),
            vmem_limit_bytes=_vmem_limit_bytes()),
        cost_estimate=pl.CostEstimate(flops=flops,
                                      transcendentals=transcendentals,
                                      bytes_accessed=bytes_accessed),
    )(x, *plist)

    if kv_head_layout:
        k_cache, v_cache = k_dense, v_dense          # already (B, nh, T, hd)
    else:
        # hd < 128: kernel stays lane-dense; restore torch layout in the wrapper.
        k_cache = k_dense.reshape(B, T, num_heads, hd).transpose(0, 2, 1, 3)
        v_cache = v_dense.reshape(B, T, num_heads, hd).transpose(0, 2, 1, 3)
    return out, k_cache, v_cache


# ------------------------ deterministic parameter init ------------------------

def init_params(key, C):
    H = 4 * C
    keys = jax.random.split(key, 20)
    ki = iter(range(20))

    def lin(din, dout):
        w = jax.random.normal(keys[next(ki)], (din, dout), jnp.float32) * 0.02
        b = jax.random.normal(keys[next(ki)], (1, dout), jnp.float32) * 0.02
        return w, b

    p = {}
    p["ln1_g"] = 1.0 + 0.1 * jax.random.normal(keys[next(ki)], (1, C), jnp.float32)
    p["ln1_b"] = 0.1 * jax.random.normal(keys[next(ki)], (1, C), jnp.float32)
    p["wq"], p["bq"] = lin(C, C)
    p["wk"], p["bk"] = lin(C, C)
    p["wv"], p["bv"] = lin(C, C)
    p["wp"], p["bp"] = lin(C, C)
    p["wz"], p["bz"] = lin(C, C)   # update_gate
    p["wr"], p["br"] = lin(C, C)   # reset_gate
    p["ln2_g"] = 1.0 + 0.1 * jax.random.normal(keys[next(ki)], (1, C), jnp.float32)
    p["ln2_b"] = 0.1 * jax.random.normal(keys[next(ki)], (1, C), jnp.float32)
    p["w1"], p["b1"] = lin(C, H)
    p["w2"], p["b2"] = lin(H, C)
    return p


# ----------------------------- pure-JAX reference -----------------------------

def ref_block(x, p, num_heads):
    B, T, C = x.shape
    hd = C // num_heads

    def ln(a, g, b):
        mu = a.mean(-1, keepdims=True)
        var = ((a - mu) ** 2).mean(-1, keepdims=True)
        return (a - mu) / jnp.sqrt(var + EPS) * g + b

    def lin(a, w, b):
        return a @ w + b

    xn = ln(x, p["ln1_g"], p["ln1_b"])
    q = lin(xn, p["wq"], p["bq"]).reshape(B, T, num_heads, hd).transpose(0, 2, 1, 3)
    k = lin(xn, p["wk"], p["bk"]).reshape(B, T, num_heads, hd).transpose(0, 2, 1, 3)
    v = lin(xn, p["wv"], p["bv"]).reshape(B, T, num_heads, hd).transpose(0, 2, 1, 3)
    att = jnp.einsum("bhqd,bhkd->bhqk", q, k) * (1.0 / math.sqrt(hd))
    mask = jnp.tril(jnp.ones((T, T), bool))
    att = jnp.where(mask, att, -jnp.inf)
    att = jax.nn.softmax(att, axis=-1)
    y = jnp.einsum("bhqk,bhkd->bhqd", att, v)
    y = y.transpose(0, 2, 1, 3).reshape(B, T, C)
    x_attn = lin(y, p["wp"], p["bp"])
    z = jax.nn.sigmoid(lin(xn, p["wz"], p["bz"]))
    r = jax.nn.sigmoid(lin(xn, p["wr"], p["br"]))
    h_tilde = jnp.tanh(r * x_attn)
    x1 = (1 - z) * x + z * h_tilde
    x2n = ln(x1, p["ln2_g"], p["ln2_b"])
    m = lin(jax.nn.gelu(lin(x2n, p["w1"], p["b1"]), approximate=False), p["w2"], p["b2"])
    out = (1 - z) * x1 + z * m
    return out, k, v


# ----------------------------------- main --------------------------------------

if __name__ == "__main__":
    B, T, C, NUM_HEADS = 2, 8, 32, 4          # small TransformerConfig-like shapes
    key = jax.random.PRNGKey(0)
    kx, kp = jax.random.split(key)
    x = jax.random.normal(kx, (B, T, C), jnp.float32)
    params = init_params(kp, C)

    out, k_cache, v_cache = block_forward(x, params, NUM_HEADS)
    jax.block_until_ready((out, k_cache, v_cache))

    ref_out, ref_k, ref_v = ref_block(x, params, NUM_HEADS)
    d_out = float(jnp.max(jnp.abs(out - ref_out)))
    d_k = float(jnp.max(jnp.abs(k_cache - ref_k)))
    d_v = float(jnp.max(jnp.abs(v_cache - ref_v)))
    # bf16 matmuls with f32 accumulation → 5e-3 tolerance.
    assert jnp.isfinite(out).all() and d_out < 5e-3 and d_k < 5e-3 and d_v < 5e-3, (
        f"mismatch: out={d_out} k={d_k} v={d_v}")

    print("KERNEL_OK")
</pallas_src>

<mosaic_0001>
module attributes {stable_mosaic.version = 11 : i64} {
  func.func @block_kernel(%arg0: i32, %arg1: i32, %arg2: memref<1x8x32xf32, #tpu.memory_space<vmem>>, %arg3: memref<32x160xbf16, #tpu.memory_space<vmem>>, %arg4: memref<1x160xf32, #tpu.memory_space<vmem>>, %arg5: memref<32x32xbf16, #tpu.memory_space<vmem>>, %arg6: memref<32x128xbf16, #tpu.memory_space<vmem>>, %arg7: memref<1x128xf32, #tpu.memory_space<vmem>>, %arg8: memref<128x32xbf16, #tpu.memory_space<vmem>>, %arg9: memref<6x32xf32, #tpu.memory_space<vmem>>, %arg10: memref<1x8x32xf32, #tpu.memory_space<vmem>>, %arg11: memref<1x8x32xf32, #tpu.memory_space<vmem>>, %arg12: memref<1x8x32xf32, #tpu.memory_space<vmem>>, %arg13: memref<8x32xbf16, #tpu.memory_space<vmem>>, %arg14: memref<8x32xbf16, #tpu.memory_space<vmem>>) attributes {dimension_semantics = [#tpu.dimension_semantics<parallel>, #tpu.dimension_semantics<arbitrary>], iteration_bounds = array<i64: 2, 1>, scalar_prefetch = 0 : i64, scratch_operands = 2 : i64, tpu.core_type = #tpu.core_type<tc>, window_params = [{transform_indices = @transform_0, window_bounds = array<i64: 1, 8, 32>}, {pipeline_mode = #tpu.pipeline_mode<synchronous>, transform_indices = @transform_1, window_bounds = array<i64: 32, 160>}, {pipeline_mode = #tpu.pipeline_mode<synchronous>, transform_indices = @transform_2, window_bounds = array<i64: 1, 160>}, {pipeline_mode = #tpu.pipeline_mode<synchronous>, transform_indices = @transform_3, window_bounds = array<i64: 32, 32>}, {pipeline_mode = #tpu.pipeline_mode<synchronous>, transform_indices = @transform_4, window_bounds = array<i64: 32, 128>}, {pipeline_mode = #tpu.pipeline_mode<synchronous>, transform_indices = @transform_5, window_bounds = array<i64: 1, 128>}, {pipeline_mode = #tpu.pipeline_mode<synchronous>, transform_indices = @transform_6, window_bounds = array<i64: 128, 32>}, {pipeline_mode = #tpu.pipeline_mode<synchronous>, transform_indices = @transform_7, window_bounds = array<i64: 6, 32>}, {transform_indices = @transform_8, window_bounds = array<i64: 1, 8, 32>}, {transform_indices = @transform_9, window_bounds = array<i64: 1, 8, 32>}, {transform_indices = @transform_10, window_bounds = array<i64: 1, 8, 32>}]} {
    %c0 = arith.constant 0 : index
    %c0_0 = arith.constant 0 : index
    %c0_1 = arith.constant 0 : index
    %0 = vector.load %arg2[%c0, %c0_0, %c0_1] : memref<1x8x32xf32, #tpu.memory_space<vmem>>, vector<1x8x32xf32>
    %1 = vector.shape_cast %0 : vector<1x8x32xf32> to vector<8x32xf32>
    %c0_2 = arith.constant 0 : index
    %c0_3 = arith.constant 0 : index
    %2 = vector.load %arg9[%c0_2, %c0_3] : memref<6x32xf32, #tpu.memory_space<vmem>>, vector<6x32xf32>
    %3 = vector.extract_strided_slice %2 {offsets = [0, 0], sizes = [1, 32], strides = [1, 1]} : vector<6x32xf32> to vector<1x32xf32>
    %4 = vector.extract_strided_slice %2 {offsets = [1, 0], sizes = [1, 32], strides = [1, 1]} : vector<6x32xf32> to vector<1x32xf32>
    %5 = vector.extract_strided_slice %2 {offsets = [2, 0], sizes = [1, 32], strides = [1, 1]} : vector<6x32xf32> to vector<1x32xf32>
    %6 = vector.extract_strided_slice %2 {offsets = [3, 0], sizes = [1, 32], strides = [1, 1]} : vector<6x32xf32> to vector<1x32xf32>
    %7 = vector.extract_strided_slice %2 {offsets = [4, 0], sizes = [1, 32], strides = [1, 1]} : vector<6x32xf32> to vector<1x32xf32>
    %8 = vector.extract_strided_slice %2 {offsets = [5, 0], sizes = [1, 32], strides = [1, 1]} : vector<6x32xf32> to vector<1x32xf32>
    %cst = arith.constant dense<0.000000e+00> : vector<8xf32>
    %9 = vector.multi_reduction <add>, %1, %cst [1] : vector<8x32xf32> to vector<8xf32>
    %10 = vector.shape_cast %9 : vector<8xf32> to vector<8x1xf32>
    %cst_4 = arith.constant 3.200000e+01 : f32
    %11 = vector.broadcast %cst_4 : f32 to vector<8x1xf32>
    %12 = arith.divf %10, %11 : vector<8x1xf32>
    %13 = vector.broadcast %12 : vector<8x1xf32> to vector<8x32xf32>
    %14 = arith.subf %1, %13 : vector<8x32xf32>
    %15 = arith.mulf %14, %14 : vector<8x32xf32>
    %cst_5 = arith.constant dense<0.000000e+00> : vector<8xf32>
    %16 = vector.multi_reduction <add>, %15, %cst_5 [1] : vector<8x32xf32> to vector<8xf32>
    %17 = vector.shape_cast %16 : vector<8xf32> to vector<8x1xf32>
    %cst_6 = arith.constant 3.200000e+01 : f32
    %18 = vector.broadcast %cst_6 : f32 to vector<8x1xf32>
    %19 = arith.divf %17, %18 : vector<8x1xf32>
    %20 = vector.broadcast %12 : vector<8x1xf32> to vector<8x32xf32>
    %21 = arith.subf %1, %20 : vector<8x32xf32>
    %cst_7 = arith.constant 9.99999974E-6 : f32
    %22 = vector.broadcast %cst_7 : f32 to vector<8x1xf32>
    %23 = arith.addf %19, %22 : vector<8x1xf32>
    %24 = math.rsqrt %23 : vector<8x1xf32>
    %25 = vector.broadcast %24 : vector<8x1xf32> to vector<8x32xf32>
    %26 = arith.mulf %21, %25 : vector<8x32xf32>
    %27 = vector.broadcast %3 : vector<1x32xf32> to vector<8x32xf32>
    %28 = arith.mulf %26, %27 : vector<8x32xf32>
    %29 = vector.broadcast %4 : vector<1x32xf32> to vector<8x32xf32>
    %30 = arith.addf %28, %29 : vector<8x32xf32>
    %31 = arith.truncf %30 : vector<8x32xf32> to vector<8x32xbf16>
    %c0_8 = arith.constant 0 : index
    %c0_9 = arith.constant 0 : index
    %32 = vector.load %arg3[%c0_8, %c0_9] : memref<32x160xbf16, #tpu.memory_space<vmem>>, vector<32x160xbf16>
    %cst_10 = arith.constant dense<0.000000e+00> : vector<8x160xf32>
    %33 = tpu.matmul %31, %32, %cst_10 {dimension_numbers = #tpu.dot_dimension_numbers<[1], [0], [0], [1], [0, 0, 1, 1], [], []>} : vector<8x32xbf16>, vector<32x160xbf16>, vector<8x160xf32> -> vector<8x160xf32>
    %c0_11 = arith.constant 0 : index
    %c0_12 = arith.constant 0 : index
    %34 = vector.load %arg4[%c0_11, %c0_12] : memref<1x160xf32, #tpu.memory_space<vmem>>, vector<1x160xf32>
    %35 = vector.broadcast %34 : vector<1x160xf32> to vector<8x160xf32>
    %36 = arith.addf %33, %35 : vector<8x160xf32>
    %37 = vector.extract_strided_slice %36 {offsets = [0, 0], sizes = [8, 32], strides = [1, 1]} : vector<8x160xf32> to vector<8x32xf32>
    %cst_13 = arith.constant 0.353553385 : f32
    %38 = vector.broadcast %cst_13 : f32 to vector<8x32xf32>
    %39 = arith.mulf %37, %38 : vector<8x32xf32>
    %40 = vector.extract_strided_slice %36 {offsets = [0, 32], sizes = [8, 32], strides = [1, 1]} : vector<8x160xf32> to vector<8x32xf32>
    %41 = vector.extract_strided_slice %36 {offsets = [0, 64], sizes = [8, 32], strides = [1, 1]} : vector<8x160xf32> to vector<8x32xf32>
    %42 = vector.extract_strided_slice %36 {offsets = [0, 96], sizes = [8, 32], strides = [1, 1]} : vector<8x160xf32> to vector<8x32xf32>
    %43 = arith.negf %42 : vector<8x32xf32>
    %44 = math.exp %43 : vector<8x32xf32>
    %cst_14 = arith.constant 1.000000e+00 : f32
    %45 = vector.broadcast %cst_14 : f32 to vector<8x32xf32>
    %46 = arith.addf %45, %44 : vector<8x32xf32>
    %47 = arith.divf %45, %46 : vector<8x32xf32>
    %48 = vector.extract_strided_slice %36 {offsets = [0, 128], sizes = [8, 32], strides = [1, 1]} : vector<8x160xf32> to vector<8x32xf32>
    %49 = arith.negf %48 : vector<8x32xf32>
    %50 = math.exp %49 : vector<8x32xf32>
    %cst_15 = arith.constant 1.000000e+00 : f32
    %51 = vector.broadcast %cst_15 : f32 to vector<8x32xf32>
    %52 = arith.addf %51, %50 : vector<8x32xf32>
    %53 = arith.divf %51, %52 : vector<8x32xf32>
    %c0_16 = arith.constant 0 : index
    %c0_17 = arith.constant 0 : index
    %c0_18 = arith.constant 0 : index
    %54 = vector.load %arg11[%c0_16, %c0_17, %c0_18] : memref<1x8x32xf32, #tpu.memory_space<vmem>>, vector<1x8x32xf32>
    %55 = vector.shape_cast %54 : vector<1x8x32xf32> to vector<8x32xf32>
    %56 = vector.shape_cast %40 : vector<8x32xf32> to vector<1x8x32xf32>
    tpu.vector_store %arg11[%c0_16, %c0_17, %c0_18], %56 {strides = array<i32>} : memref<1x8x32xf32, #tpu.memory_space<vmem>>, vector<1x8x32xf32>,
    %c0_19 = arith.constant 0 : index
    %c0_20 = arith.constant 0 : index
    %c0_21 = arith.constant 0 : index
    %57 = vector.load %arg12[%c0_19, %c0_20, %c0_21] : memref<1x8x32xf32, #tpu.memory_space<vmem>>, vector<1x8x32xf32>
    %58 = vector.shape_cast %57 : vector<1x8x32xf32> to vector<8x32xf32>
    %59 = vector.shape_cast %41 : vector<8x32xf32> to vector<1x8x32xf32>
    tpu.vector_store %arg12[%c0_19, %c0_20, %c0_21], %59 {strides = array<i32>} : memref<1x8x32xf32, #tpu.memory_space<vmem>>, vector<1x8x32xf32>,
    %c8_i32 = arith.constant 8 : i32
    %60 = arith.muli %arg1, %c8_i32 : i32
    %61 = tpu.assume_multiple %60, 8 : i32
    %62 = arith.truncf %40 : vector<8x32xf32> to vector<8x32xbf16>
    %63 = arith.index_cast %61 : i32 to index
    %c0_22 = arith.constant 0 : index
    %64 = vector.load %arg13[%63, %c0_22] : memref<8x32xbf16, #tpu.memory_space<vmem>>, vector<8x32xbf16>
    tpu.vector_store %arg13[%63, %c0_22], %62 {strides = array<i32>} : memref<8x32xbf16, #tpu.memory_space<vmem>>, vector<8x32xbf16>,
    %65 = arith.truncf %41 : vector<8x32xf32> to vector<8x32xbf16>
    %66 = arith.index_cast %61 : i32 to index
    %c0_23 = arith.constant 0 : index
    %67 = vector.load %arg14[%66, %c0_23] : memref<8x32xbf16, #tpu.memory_space<vmem>>, vector<8x32xbf16>
    tpu.vector_store %arg14[%66, %c0_23], %65 {strides = array<i32>} : memref<8x32xbf16, #tpu.memory_space<vmem>>, vector<8x32xbf16>,
    %68 = arith.truncf %39 : vector<8x32xf32> to vector<8x32xbf16>
    %69 = tpu.iota {dimensions = array<i32: 0>} : vector<8x8xi32>
    %70 = tpu.iota {dimensions = array<i32: 1>} : vector<8x8xi32>
    %cst_24 = arith.constant 0.000000e+00 : f32
    %71 = vector.broadcast %cst_24 : f32 to vector<8x32xf32>
    %72 = vector.extract_strided_slice %68 {offsets = [0, 0], sizes = [8, 8], strides = [1, 1]} : vector<8x32xbf16> to vector<8x8xbf16>
    %cst_25 = arith.constant -1.000000e+30 : f32
    %73 = vector.broadcast %cst_25 : f32 to vector<8x1xf32>
    %cst_26 = arith.constant 0.000000e+00 : f32
    %74 = vector.broadcast %cst_26 : f32 to vector<8x1xf32>
    %cst_27 = arith.constant 0.000000e+00 : f32
    %75 = vector.broadcast %cst_27 : f32 to vector<8x8xf32>
    %c0_i32 = arith.constant 0 : i32
    %76 = tpu.assume_multiple %c0_i32, 8 : i32
    %77 = arith.index_cast %76 : i32 to index
    %c0_28 = arith.constant 0 : index
    %78 = vector.load %arg13[%77, %c0_28] : memref<8x32xbf16, #tpu.memory_space<vmem>>, vector<8x8xbf16>
    %79 = arith.index_cast %76 : i32 to index
    %c0_29 = arith.constant 0 : index
    %80 = vector.load %arg14[%79, %c0_29] : memref<8x32xbf16, #tpu.memory_space<vmem>>, vector<8x8xbf16>
    %cst_30 = arith.constant dense<0.000000e+00> : vector<8x8xf32>
    %81 = tpu.matmul %72, %78, %cst_30 {dimension_numbers = #tpu.dot_dimension_numbers<[1], [1], [0], [0], [0, 0, 1, 0], [], []>} : vector<8x8xbf16>, vector<8x8xbf16>, vector<8x8xf32> -> vector<8x8xf32>
    %c8_i32_31 = arith.constant 8 : i32
    %82 = arith.muli %arg1, %c8_i32_31 : i32
    %83 = vector.broadcast %82 : i32 to vector<8x8xi32>
    %84 = arith.addi %83, %69 : vector<8x8xi32>
    %c0_i32_32 = arith.constant 0 : i32
    %85 = vector.broadcast %c0_i32_32 : i32 to vector<8x8xi32>
    %86 = arith.addi %85, %70 : vector<8x8xi32>
    %87 = arith.cmpi sge, %84, %86 : vector<8x8xi32>
    %cst_33 = arith.constant -1.000000e+30 : f32
    %88 = vector.broadcast %cst_33 : f32 to vector<8x8xf32>
    %89 = arith.select %87, %81, %88 : vector<8x8xi1>, vector<8x8xf32>
    %cst_34 = arith.constant dense<0xFF800000> : vector<8xf32>
    %90 = vector.multi_reduction <maximumf>, %89, %cst_34 [1] : vector<8x8xf32> to vector<8xf32>
    %91 = vector.shape_cast %90 : vector<8xf32> to vector<8x1xf32>
    %92 = arith.maximumf %73, %91 : vector<8x1xf32>
    %93 = arith.subf %73, %92 : vector<8x1xf32>
    %94 = math.exp %93 : vector<8x1xf32>
    %95 = vector.broadcast %92 : vector<8x1xf32> to vector<8x8xf32>
    %96 = arith.subf %89, %95 : vector<8x8xf32>
    %97 = math.exp %96 : vector<8x8xf32>
    %98 = arith.mulf %94, %74 : vector<8x1xf32>
    %cst_35 = arith.constant dense<0.000000e+00> : vector<8xf32>
    %99 = vector.multi_reduction <add>, %97, %cst_35 [1] : vector<8x8xf32> to vector<8xf32>
    %100 = vector.shape_cast %99 : vector<8xf32> to vector<8x1xf32>
    %101 = arith.addf %98, %100 : vector<8x1xf32>
    %102 = vector.broadcast %94 : vector<8x1xf32> to vector<8x8xf32>
    %103 = arith.mulf %102, %75 : vector<8x8xf32>
    %104 = arith.truncf %97 : vector<8x8xf32> to vector<8x8xbf16>
    %cst_36 = arith.constant dense<0.000000e+00> : vector<8x8xf32>
    %105 = tpu.matmul %104, %80, %cst_36 {dimension_numbers = #tpu.dot_dimension_numbers<[1], [0], [0], [1], [0, 0, 1, 1], [], []>} : vector<8x8xbf16>, vector<8x8xbf16>, vector<8x8xf32> -> vector<8x8xf32>
    %106 = arith.addf %103, %105 : vector<8x8xf32>
    %107 = tpu.reciprocal %101 {approx = true} : vector<8x1xf32> -> vector<8x1xf32>
    %108 = vector.broadcast %107 : vector<8x1xf32> to vector<8x8xf32>
    %109 = arith.mulf %106, %108 : vector<8x8xf32>
    %110 = arith.truncf %109 : vector<8x8xf32> to vector<8x8xbf16>
    %c0_37 = arith.constant 0 : index
    %c0_38 = arith.constant 0 : index
    %111 = vector.load %arg5[%c0_37, %c0_38] : memref<32x32xbf16, #tpu.memory_space<vmem>>, vector<8x32xbf16>
    %cst_39 = arith.constant dense<0.000000e+00> : vector<8x32xf32>
    %112 = tpu.matmul %110, %111, %cst_39 {dimension_numbers = #tpu.dot_dimension_numbers<[1], [0], [0], [1], [0, 0, 1, 1], [], []>} : vector<8x8xbf16>, vector<8x32xbf16>, vector<8x32xf32> -> vector<8x32xf32>
    %113 = arith.addf %71, %112 : vector<8x32xf32>
    %114 = vector.extract_strided_slice %68 {offsets = [0, 8], sizes = [8, 8], strides = [1, 1]} : vector<8x32xbf16> to vector<8x8xbf16>
    %cst_40 = arith.constant -1.000000e+30 : f32
    %115 = vector.broadcast %cst_40 : f32 to vector<8x1xf32>
    %cst_41 = arith.constant 0.000000e+00 : f32
    %116 = vector.broadcast %cst_41 : f32 to vector<8x1xf32>
    %cst_42 = arith.constant 0.000000e+00 : f32
    %117 = vector.broadcast %cst_42 : f32 to vector<8x8xf32>
    %c0_i32_43 = arith.constant 0 : i32
    %118 = tpu.assume_multiple %c0_i32_43, 8 : i32
    %119 = arith.index_cast %118 : i32 to index
    %c8 = arith.constant 8 : index
    %120 = vector.load %arg13[%119, %c8] : memref<8x32xbf16, #tpu.memory_space<vmem>>, vector<8x8xbf16>
    %121 = arith.index_cast %118 : i32 to index
    %c8_44 = arith.constant 8 : index
    %122 = vector.load %arg14[%121, %c8_44] : memref<8x32xbf16, #tpu.memory_space<vmem>>, vector<8x8xbf16>
    %cst_45 = arith.constant dense<0.000000e+00> : vector<8x8xf32>
    %123 = tpu.matmul %114, %120, %cst_45 {dimension_numbers = #tpu.dot_dimension_numbers<[1], [1], [0], [0], [0, 0, 1, 0], [], []>} : vector<8x8xbf16>, vector<8x8xbf16>, vector<8x8xf32> -> vector<8x8xf32>
    %c8_i32_46 = arith.constant 8 : i32
    %124 = arith.muli %arg1, %c8_i32_46 : i32
    %125 = vector.broadcast %124 : i32 to vector<8x8xi32>
    %126 = arith.addi %125, %69 : vector<8x8xi32>
    %c0_i32_47 = arith.constant 0 : i32
    %127 = vector.broadcast %c0_i32_47 : i32 to vector<8x8xi32>
    %128 = arith.addi %127, %70 : vector<8x8xi32>
    %129 = arith.cmpi sge, %126, %128 : vector<8x8xi32>
    %cst_48 = arith.constant -1.000000e+30 : f32
    %130 = vector.broadcast %cst_48 : f32 to vector<8x8xf32>
    %131 = arith.select %129, %123, %130 : vector<8x8xi1>, vector<8x8xf32>
    %cst_49 = arith.constant dense<0xFF800000> : vector<8xf32>
    %132 = vector.multi_reduction <maximumf>, %131, %cst_49 [1] : vector<8x8xf32> to vector<8xf32>
    %133 = vector.shape_cast %132 : vector<8xf32> to vector<8x1xf32>
    %134 = arith.maximumf %115, %133 : vector<8x1xf32>
    %135 = arith.subf %115, %134 : vector<8x1xf32>
    %136 = math.exp %135 : vector<8x1xf32>
    %137 = vector.broadcast %134 : vector<8x1xf32> to vector<8x8xf32>
    %138 = arith.subf %131, %137 : vector<8x8xf32>
    %139 = math.exp %138 : vector<8x8xf32>
    %140 = arith.mulf %136, %116 : vector<8x1xf32>
    %cst_50 = arith.constant dense<0.000000e+00> : vector<8xf32>
    %141 = vector.multi_reduction <add>, %139, %cst_50 [1] : vector<8x8xf32> to vector<8xf32>
    %142 = vector.shape_cast %141 : vector<8xf32> to vector<8x1xf32>
    %143 = arith.addf %140, %142 : vector<8x1xf32>
    %144 = vector.broadcast %136 : vector<8x1xf32> to vector<8x8xf32>
    %145 = arith.mulf %144, %117 : vector<8x8xf32>
    %146 = arith.truncf %139 : vector<8x8xf32> to vector<8x8xbf16>
    %cst_51 = arith.constant dense<0.000000e+00> : vector<8x8xf32>
    %147 = tpu.matmul %146, %122, %cst_51 {dimension_numbers = #tpu.dot_dimension_numbers<[1], [0], [0], [1], [0, 0, 1, 1], [], []>} : vector<8x8xbf16>, vector<8x8xbf16>, vector<8x8xf32> -> vector<8x8xf32>
    %148 = arith.addf %145, %147 : vector<8x8xf32>
    %149 = tpu.reciprocal %143 {approx = true} : vector<8x1xf32> -> vector<8x1xf32>
    %150 = vector.broadcast %149 : vector<8x1xf32> to vector<8x8xf32>
    %151 = arith.mulf %148, %150 : vector<8x8xf32>
    %152 = arith.truncf %151 : vector<8x8xf32> to vector<8x8xbf16>
    %c8_52 = arith.constant 8 : index
    %c0_53 = arith.constant 0 : index
    %153 = vector.load %arg5[%c8_52, %c0_53] : memref<32x32xbf16, #tpu.memory_space<vmem>>, vector<8x32xbf16>
    %cst_54 = arith.constant dense<0.000000e+00> : vector<8x32xf32>
    %154 = tpu.matmul %152, %153, %cst_54 {dimension_numbers = #tpu.dot_dimension_numbers<[1], [0], [0], [1], [0, 0, 1, 1], [], []>} : vector<8x8xbf16>, vector<8x32xbf16>, vector<8x32xf32> -> vector<8x32xf32>
    %155 = arith.addf %113, %154 : vector<8x32xf32>
    %156 = vector.extract_strided_slice %68 {offsets = [0, 16], sizes = [8, 8], strides = [1, 1]} : vector<8x32xbf16> to vector<8x8xbf16>
    %cst_55 = arith.constant -1.000000e+30 : f32
    %157 = vector.broadcast %cst_55 : f32 to vector<8x1xf32>
    %cst_56 = arith.constant 0.000000e+00 : f32
    %158 = vector.broadcast %cst_56 : f32 to vector<8x1xf32>
    %cst_57 = arith.constant 0.000000e+00 : f32
    %159 = vector.broadcast %cst_57 : f32 to vector<8x8xf32>
    %c0_i32_58 = arith.constant 0 : i32
    %160 = tpu.assume_multiple %c0_i32_58, 8 : i32
    %161 = arith.index_cast %160 : i32 to index
    %c16 = arith.constant 16 : index
    %162 = vector.load %arg13[%161, %c16] : memref<8x32xbf16, #tpu.memory_space<vmem>>, vector<8x8xbf16>
    %163 = arith.index_cast %160 : i32 to index
    %c16_59 = arith.constant 16 : index
    %164 = vector.load %arg14[%163, %c16_59] : memref<8x32xbf16, #tpu.memory_space<vmem>>, vector<8x8xbf16>
    %cst_60 = arith.constant dense<0.000000e+00> : vector<8x8xf32>
    %165 = tpu.matmul %156, %162, %cst_60 {dimension_numbers = #tpu.dot_dimension_numbers<[1], [1], [0], [0], [0, 0, 1, 0], [], []>} : vector<8x8xbf16>, vector<8x8xbf16>, vector<8x8xf32> -> vector<8x8xf32>
    %c8_i32_61 = arith.constant 8 : i32
    %166 = arith.muli %arg1, %c8_i32_61 : i32
    %167 = vector.broadcast %166 : i32 to vector<8x8xi32>
    %168 = arith.addi %167, %69 : vector<8x8xi32>
    %c0_i32_62 = arith.constant 0 : i32
    %169 = vector.broadcast %c0_i32_62 : i32 to vector<8x8xi32>
    %170 = arith.addi %169, %70 : vector<8x8xi32>
    %171 = arith.cmpi sge, %168, %170 : vector<8x8xi32>
    %cst_63 = arith.constant -1.000000e+30 : f32
    %172 = vector.broadcast %cst_63 : f32 to vector<8x8xf32>
    %173 = arith.select %171, %165, %172 : vector<8x8xi1>, vector<8x8xf32>
    %cst_64 = arith.constant dense<0xFF800000> : vector<8xf32>
    %174 = vector.multi_reduction <maximumf>, %173, %cst_64 [1] : vector<8x8xf32> to vector<8xf32>
    %175 = vector.shape_cast %174 : vector<8xf32> to vector<8x1xf32>
    %176 = arith.maximumf %157, %175 : vector<8x1xf32>
    %177 = arith.subf %157, %176 : vector<8x1xf32>
    %178 = math.exp %177 : vector<8x1xf32>
    %179 = vector.broadcast %176 : vector<8x1xf32> to vector<8x8xf32>
    %180 = arith.subf %173, %179 : vector<8x8xf32>
    %181 = math.exp %180 : vector<8x8xf32>
    %182 = arith.mulf %178, %158 : vector<8x1xf32>
    %cst_65 = arith.constant dense<0.000000e+00> : vector<8xf32>
    %183 = vector.multi_reduction <add>, %181, %cst_65 [1] : vector<8x8xf32> to vector<8xf32>
    %184 = vector.shape_cast %183 : vector<8xf32> to vector<8x1xf32>
    %185 = arith.addf %182, %184 : vector<8x1xf32>
    %186 = vector.broadcast %178 : vector<8x1xf32> to vector<8x8xf32>
    %187 = arith.mulf %186, %159 : vector<8x8xf32>
    %188 = arith.truncf %181 : vector<8x8xf32> to vector<8x8xbf16>
    %cst_66 = arith.constant dense<0.000000e+00> : vector<8x8xf32>
    %189 = tpu.matmul %188, %164, %cst_66 {dimension_numbers = #tpu.dot_dimension_numbers<[1], [0], [0], [1], [0, 0, 1, 1], [], []>} : vector<8x8xbf16>, vector<8x8xbf16>, vector<8x8xf32> -> vector<8x8xf32>
    %190 = arith.addf %187, %189 : vector<8x8xf32>
    %191 = tpu.reciprocal %185 {approx = true} : vector<8x1xf32> -> vector<8x1xf32>
    %192 = vector.broadcast %191 : vector<8x1xf32> to vector<8x8xf32>
    %193 = arith.mulf %190, %192 : vector<8x8xf32>
    %194 = arith.truncf %193 : vector<8x8xf32> to vector<8x8xbf16>
    %c16_67 = arith.constant 16 : index
    %c0_68 = arith.constant 0 : index
    %195 = vector.load %arg5[%c16_67, %c0_68] : memref<32x32xbf16, #tpu.memory_space<vmem>>, vector<8x32xbf16>
    %cst_69 = arith.constant dense<0.000000e+00> : vector<8x32xf32>
    %196 = tpu.matmul %194, %195, %cst_69 {dimension_numbers = #tpu.dot_dimension_numbers<[1], [0], [0], [1], [0, 0, 1, 1], [], []>} : vector<8x8xbf16>, vector<8x32xbf16>, vector<8x32xf32> -> vector<8x32xf32>
    %197 = arith.addf %155, %196 : vector<8x32xf32>
    %198 = vector.extract_strided_slice %68 {offsets = [0, 24], sizes = [8, 8], strides = [1, 1]} : vector<8x32xbf16> to vector<8x8xbf16>
    %cst_70 = arith.constant -1.000000e+30 : f32
    %199 = vector.broadcast %cst_70 : f32 to vector<8x1xf32>
    %cst_71 = arith.constant 0.000000e+00 : f32
    %200 = vector.broadcast %cst_71 : f32 to vector<8x1xf32>
    %cst_72 = arith.constant 0.000000e+00 : f32
    %201 = vector.broadcast %cst_72 : f32 to vector<8x8xf32>
    %c0_i32_73 = arith.constant 0 : i32
    %202 = tpu.assume_multiple %c0_i32_73, 8 : i32
    %203 = arith.index_cast %202 : i32 to index
    %c24 = arith.constant 24 : index
    %204 = vector.load %arg13[%203, %c24] : memref<8x32xbf16, #tpu.memory_space<vmem>>, vector<8x8xbf16>
    %205 = arith.index_cast %202 : i32 to index
    %c24_74 = arith.constant 24 : index
    %206 = vector.load %arg14[%205, %c24_74] : memref<8x32xbf16, #tpu.memory_space<vmem>>, vector<8x8xbf16>
    %cst_75 = arith.constant dense<0.000000e+00> : vector<8x8xf32>
    %207 = tpu.matmul %198, %204, %cst_75 {dimension_numbers = #tpu.dot_dimension_numbers<[1], [1], [0], [0], [0, 0, 1, 0], [], []>} : vector<8x8xbf16>, vector<8x8xbf16>, vector<8x8xf32> -> vector<8x8xf32>
    %c8_i32_76 = arith.constant 8 : i32
    %208 = arith.muli %arg1, %c8_i32_76 : i32
    %209 = vector.broadcast %208 : i32 to vector<8x8xi32>
    %210 = arith.addi %209, %69 : vector<8x8xi32>
    %c0_i32_77 = arith.constant 0 : i32
    %211 = vector.broadcast %c0_i32_77 : i32 to vector<8x8xi32>
    %212 = arith.addi %211, %70 : vector<8x8xi32>
    %213 = arith.cmpi sge, %210, %212 : vector<8x8xi32>
    %cst_78 = arith.constant -1.000000e+30 : f32
    %214 = vector.broadcast %cst_78 : f32 to vector<8x8xf32>
    %215 = arith.select %213, %207, %214 : vector<8x8xi1>, vector<8x8xf32>
    %cst_79 = arith.constant dense<0xFF800000> : vector<8xf32>
    %216 = vector.multi_reduction <maximumf>, %215, %cst_79 [1] : vector<8x8xf32> to vector<8xf32>
    %217 = vector.shape_cast %216 : vector<8xf32> to vector<8x1xf32>
    %218 = arith.maximumf %199, %217 : vector<8x1xf32>
    %219 = arith.subf %199, %218 : vector<8x1xf32>
    %220 = math.exp %219 : vector<8x1xf32>
    %221 = vector.broadcast %218 : vector<8x1xf32> to vector<8x8xf32>
    %222 = arith.subf %215, %221 : vector<8x8xf32>
    %223 = math.exp %222 : vector<8x8xf32>
    %224 = arith.mulf %220, %200 : vector<8x1xf32>
    %cst_80 = arith.constant dense<0.000000e+00> : vector<8xf32>
    %225 = vector.multi_reduction <add>, %223, %cst_80 [1] : vector<8x8xf32> to vector<8xf32>
    %226 = vector.shape_cast %225 : vector<8xf32> to vector<8x1xf32>
    %227 = arith.addf %224, %226 : vector<8x1xf32>
    %228 = vector.broadcast %220 : vector<8x1xf32> to vector<8x8xf32>
    %229 = arith.mulf %228, %201 : vector<8x8xf32>
    %230 = arith.truncf %223 : vector<8x8xf32> to vector<8x8xbf16>
    %cst_81 = arith.constant dense<0.000000e+00> : vector<8x8xf32>
    %231 = tpu.matmul %230, %206, %cst_81 {dimension_numbers = #tpu.dot_dimension_numbers<[1], [0], [0], [1], [0, 0, 1, 1], [], []>} : vector<8x8xbf16>, vector<8x8xbf16>, vector<8x8xf32> -> vector<8x8xf32>
    %232 = arith.addf %229, %231 : vector<8x8xf32>
    %233 = tpu.reciprocal %227 {approx = true} : vector<8x1xf32> -> vector<8x1xf32>
    %234 = vector.broadcast %233 : vector<8x1xf32> to vector<8x8xf32>
    %235 = arith.mulf %232, %234 : vector<8x8xf32>
    %236 = arith.truncf %235 : vector<8x8xf32> to vector<8x8xbf16>
    %c24_82 = arith.constant 24 : index
    %c0_83 = arith.constant 0 : index
    %237 = vector.load %arg5[%c24_82, %c0_83] : memref<32x32xbf16, #tpu.memory_space<vmem>>, vector<8x32xbf16>
    %cst_84 = arith.constant dense<0.000000e+00> : vector<8x32xf32>
    %238 = tpu.matmul %236, %237, %cst_84 {dimension_numbers = #tpu.dot_dimension_numbers<[1], [0], [0], [1], [0, 0, 1, 1], [], []>} : vector<8x8xbf16>, vector<8x32xbf16>, vector<8x32xf32> -> vector<8x32xf32>
    %239 = arith.addf %197, %238 : vector<8x32xf32>
    %240 = vector.broadcast %7 : vector<1x32xf32> to vector<8x32xf32>
    %241 = arith.addf %239, %240 : vector<8x32xf32>
    %242 = arith.mulf %53, %241 : vector<8x32xf32>
    %243 = math.tanh %242 : vector<8x32xf32>
    %244 = arith.subf %243, %1 : vector<8x32xf32>
    %245 = arith.mulf %47, %244 : vector<8x32xf32>
    %246 = arith.addf %1, %245 : vector<8x32xf32>
    %cst_85 = arith.constant dense<0.000000e+00> : vector<8xf32>
    %247 = vector.multi_reduction <add>, %246, %cst_85 [1] : vector<8x32xf32> to vector<8xf32>
    %248 = vector.shape_cast %247 : vector<8xf32> to vector<8x1xf32>
    %cst_86 = arith.constant 3.200000e+01 : f32
    %249 = vector.broadcast %cst_86 : f32 to vector<8x1xf32>
    %250 = arith.divf %248, %249 : vector<8x1xf32>
    %251 = vector.broadcast %250 : vector<8x1xf32> to vector<8x32xf32>
    %252 = arith.subf %246, %251 : vector<8x32xf32>
    %253 = arith.mulf %252, %252 : vector<8x32xf32>
    %cst_87 = arith.constant dense<0.000000e+00> : vector<8xf32>
    %254 = vector.multi_reduction <add>, %253, %cst_87 [1] : vector<8x32xf32> to vector<8xf32>
    %255 = vector.shape_cast %254 : vector<8xf32> to vector<8x1xf32>
    %cst_88 = arith.constant 3.200000e+01 : f32
    %256 = vector.broadcast %cst_88 : f32 to vector<8x1xf32>
    %257 = arith.divf %255, %256 : vector<8x1xf32>
    %258 = vector.broadcast %250 : vector<8x1xf32> to vector<8x32xf32>
    %259 = arith.subf %246, %258 : vector<8x32xf32>
    %cst_89 = arith.constant 9.99999974E-6 : f32
    %260 = vector.broadcast %cst_89 : f32 to vector<8x1xf32>
    %261 = arith.addf %257, %260 : vector<8x1xf32>
    %262 = math.rsqrt %261 : vector<8x1xf32>
    %263 = vector.broadcast %262 : vector<8x1xf32> to vector<8x32xf32>
    %264 = arith.mulf %259, %263 : vector<8x32xf32>
    %265 = vector.broadcast %5 : vector<1x32xf32> to vector<8x32xf32>
    %266 = arith.mulf %264, %265 : vector<8x32xf32>
    %267 = vector.broadcast %6 : vector<1x32xf32> to vector<8x32xf32>
    %268 = arith.addf %266, %267 : vector<8x32xf32>
    %269 = arith.truncf %268 : vector<8x32xf32> to vector<8x32xbf16>
    %c0_90 = arith.constant 0 : index
    %c0_91 = arith.constant 0 : index
    %270 = vector.load %arg6[%c0_90, %c0_91] : memref<32x128xbf16, #tpu.memory_space<vmem>>, vector<32x128xbf16>
    %cst_92 = arith.constant dense<0.000000e+00> : vector<8x128xf32>
    %271 = tpu.matmul %269, %270, %cst_92 {dimension_numbers = #tpu.dot_dimension_numbers<[1], [0], [0], [1], [0, 0, 1, 1], [], []>} : vector<8x32xbf16>, vector<32x128xbf16>, vector<8x128xf32> -> vector<8x128xf32>
    %c0_93 = arith.constant 0 : index
    %c0_94 = arith.constant 0 : index
    %272 = vector.load %arg7[%c0_93, %c0_94] : memref<1x128xf32, #tpu.memory_space<vmem>>, vector<1x128xf32>
    %273 = vector.broadcast %272 : vector<1x128xf32> to vector<8x128xf32>
    %274 = arith.addf %271, %273 : vector<8x128xf32>
    %cst_95 = arith.constant 5.000000e-01 : f32
    %275 = vector.broadcast %cst_95 : f32 to vector<8x128xf32>
    %276 = arith.mulf %275, %274 : vector<8x128xf32>
    %cst_96 = arith.constant 4.471500e-02 : f32
    %277 = vector.broadcast %cst_96 : f32 to vector<8x128xf32>
    %278 = arith.mulf %277, %274 : vector<8x128xf32>
    %279 = arith.mulf %278, %274 : vector<8x128xf32>
    %280 = arith.mulf %279, %274 : vector<8x128xf32>
    %281 = arith.addf %274, %280 : vector<8x128xf32>
    %cst_97 = arith.constant 0.797884583 : f32
    %282 = vector.broadcast %cst_97 : f32 to vector<8x128xf32>
    %283 = arith.mulf %282, %281 : vector<8x128xf32>
    %284 = math.tanh %283 : vector<8x128xf32>
    %cst_98 = arith.constant 1.000000e+00 : f32
    %285 = vector.broadcast %cst_98 : f32 to vector<8x128xf32>
    %286 = arith.addf %285, %284 : vector<8x128xf32>
    %287 = arith.mulf %276, %286 : vector<8x128xf32>
    %288 = arith.truncf %287 : vector<8x128xf32> to vector<8x128xbf16>
    %c0_99 = arith.constant 0 : index
    %c0_100 = arith.constant 0 : index
    %289 = vector.load %arg8[%c0_99, %c0_100] : memref<128x32xbf16, #tpu.memory_space<vmem>>, vector<128x32xbf16>
    %cst_101 = arith.constant dense<0.000000e+00> : vector<8x32xf32>
    %290 = tpu.matmul %288, %289, %cst_101 {dimension_numbers = #tpu.dot_dimension_numbers<[1], [0], [0], [1], [0, 0, 1, 1], [], []>} : vector<8x128xbf16>, vector<128x32xbf16>, vector<8x32xf32> -> vector<8x32xf32>
    %291 = vector.broadcast %8 : vector<1x32xf32> to vector<8x32xf32>
    %292 = arith.addf %290, %291 : vector<8x32xf32>
    %293 = arith.subf %292, %246 : vector<8x32xf32>
    %294 = arith.mulf %47, %293 : vector<8x32xf32>
    %295 = arith.addf %246, %294 : vector<8x32xf32>
    %c0_102 = arith.constant 0 : index
    %c0_103 = arith.constant 0 : index
    %c0_104 = arith.constant 0 : index
    %296 = vector.load %arg10[%c0_102, %c0_103, %c0_104] : memref<1x8x32xf32, #tpu.memory_space<vmem>>, vector<1x8x32xf32>
    %297 = vector.shape_cast %296 : vector<1x8x32xf32> to vector<8x32xf32>
    %298 = vector.shape_cast %295 : vector<8x32xf32> to vector<1x8x32xf32>
    tpu.vector_store %arg10[%c0_102, %c0_103, %c0_104], %298 {strides = array<i32>} : memref<1x8x32xf32, #tpu.memory_space<vmem>>, vector<1x8x32xf32>,
    return
  }
  func.func @transform_0(%arg0: i32, %arg1: i32) -> (i32, i32, i32) {
    %c0_i32 = arith.constant 0 : i32
    %c0_i32_0 = arith.constant 0 : i32
    return %arg0, %arg1, %c0_i32 : i32, i32, i32
  }
  func.func @transform_1(%arg0: i32, %arg1: i32) -> (i32, i32) {
    %c0_i32 = arith.constant 0 : i32
    %c0_i32_0 = arith.constant 0 : i32
    %c0_i32_1 = arith.constant 0 : i32
    return %c0_i32, %c0_i32_0 : i32, i32
  }
  func.func @transform_2(%arg0: i32, %arg1: i32) -> (i32, i32) {
    %c0_i32 = arith.constant 0 : i32
    %c0_i32_0 = arith.constant 0 : i32
    %c0_i32_1 = arith.constant 0 : i32
    return %c0_i32, %c0_i32_0 : i32, i32
  }
  func.func @transform_3(%arg0: i32, %arg1: i32) -> (i32, i32) {
    %c0_i32 = arith.constant 0 : i32
    %c0_i32_0 = arith.constant 0 : i32
    %c0_i32_1 = arith.constant 0 : i32
    return %c0_i32, %c0_i32_0 : i32, i32
  }
  func.func @transform_4(%arg0: i32, %arg1: i32) -> (i32, i32) {
    %c0_i32 = arith.constant 0 : i32
    %c0_i32_0 = arith.constant 0 : i32
    %c0_i32_1 = arith.constant 0 : i32
    return %c0_i32, %c0_i32_0 : i32, i32
  }
  func.func @transform_5(%arg0: i32, %arg1: i32) -> (i32, i32) {
    %c0_i32 = arith.constant 0 : i32
    %c0_i32_0 = arith.constant 0 : i32
    %c0_i32_1 = arith.constant 0 : i32
    return %c0_i32, %c0_i32_0 : i32, i32
  }
  func.func @transform_6(%arg0: i32, %arg1: i32) -> (i32, i32) {
    %c0_i32 = arith.constant 0 : i32
    %c0_i32_0 = arith.constant 0 : i32
    %c0_i32_1 = arith.constant 0 : i32
    return %c0_i32, %c0_i32_0 : i32, i32
  }
  func.func @transform_7(%arg0: i32, %arg1: i32) -> (i32, i32) {
    %c0_i32 = arith.constant 0 : i32
    %c0_i32_0 = arith.constant 0 : i32
    %c0_i32_1 = arith.constant 0 : i32
    return %c0_i32, %c0_i32_0 : i32, i32
  }
  func.func @transform_8(%arg0: i32, %arg1: i32) -> (i32, i32, i32) {
    %c0_i32 = arith.constant 0 : i32
    %c0_i32_0 = arith.constant 0 : i32
    return %arg0, %arg1, %c0_i32 : i32, i32, i32
  }
  func.func @transform_9(%arg0: i32, %arg1: i32) -> (i32, i32, i32) {
    %c0_i32 = arith.constant 0 : i32
    %c0_i32_0 = arith.constant 0 : i32
    return %arg0, %arg1, %c0_i32 : i32, i32, i32
  }
  func.func @transform_10(%arg0: i32, %arg1: i32) -> (i32, i32, i32) {
    %c0_i32 = arith.constant 0 : i32
    %c0_i32_0 = arith.constant 0 : i32
    return %arg0, %arg1, %c0_i32 : i32, i32, i32
  }
}

</mosaic_0001>

<bundles_post_ra>
// kernel: block_forward.1
= control target key start
LH: loop header
LB: loop body
LE: loop exit
PB: predicated region body
PF: predicated region fallthrough
CT: control target
= control target key end

     0   :  { %s2487_s0 = inlined_call_operand.vmem [shape: f32[2,8,32], index: 0, kind: input, shape index: {}]   ;;  %s2488_s1 = inlined_call_operand.vmem [shape: bf16[32,160], index: 1, kind: input, shape index: {}]   ;;  %s2489_s2 = inlined_call_operand.vmem [shape: f32[1,160], index: 2, kind: input, shape index: {}]   ;;  %s2490_s3 = inlined_call_operand.vmem [shape: bf16[32,32], index: 3, kind: input, shape index: {}]   ;;  %s2491_s4 = inlined_call_operand.vmem [shape: bf16[32,128], index: 4, kind: input, shape index: {}]   ;;  %s2492_s5 = inlined_call_operand.vmem [shape: f32[1,128], index: 5, kind: input, shape index: {}]   ;;  %s2493_s6 = inlined_call_operand.vmem [shape: bf16[128,32], index: 6, kind: input, shape index: {}]   ;;  %s2494_s7 = inlined_call_operand.vmem [shape: f32[6,32], index: 7, kind: input, shape index: {}]   ;;  %s2495_s8 = inlined_call_operand.hbm [shape: f32[2,8,32], index: 8, kind: output, shape index: {0}]   ;;  %s2496_s9 = inlined_call_operand.vmem [shape: f32[2,8,32], index: 9, kind: output, shape index: {1}]   ;;  %s2497_s10 = inlined_call_operand.vmem [shape: f32[2,8,32], index: 10, kind: output, shape index: {2}]  }
   0x1   :  { %2499 = sst [smem:[#allocation7_spill]] %s2487_s0 }
   0x2   :  { %2500 = sst [smem:[#allocation8_spill]] %s2488_s1 }
   0x3   :  { %16 = vsyncpa [#allocation5], 0 }
   0x4   :  { %18 = vsyncpa [#allocation5 + $0x1], 0  ;;  %s2108_s13 = smov 0   ;;  %s2110_s14 = smov 0  }
   0x5   :  { %s2112_s15 = smov 0   ;;  %s2114_s16 = smov 0  }
   0x6   :  { %s2116_s17 = smov 0   ;;  %s2118_s18 = smov 0  }
   0x7 LB: > { %s1657_s19 = sadd.s32 4294967295, %s2041_s18   ;;  %s1658_s20 = sadd.s32 4294967294, %s2041_s18   ;;  %s2041_s18 = sphi %s2118_s18, %s24_s18   ;;  %s2037_s17 = sphi %s2116_s17, %s2510_s17   ;;  %s2033_s16 = sphi %s2114_s16, %s2509_s16   ;;  %s2029_s15 = sphi %s2112_s15, %s2508_s15   ;;  %s2025_s14 = sphi %s2110_s14, %s2507_s14   ;;  %s2021_s13 = sphi %s2108_s13, %s2506_s13  }
   0x8   : > { %s36_s21 = sadd.s32 1, %s2037_s17  ;;  %s220_s22 = sadd.s32 1, %s2029_s15 }
   0x9   : > { %p38_p0 = scmp.ge.s32.totalorder %s36_s21, 2  ;;  %p230_p1 = scmp.ne.s32.totalorder %s2029_s15, %s2025_s14 }
   0xa   : > { %p231_p2 = scmp.eq.s32.totalorder %s1657_s19, 1  ;;  %p236_p3 = scmp.ne.s32.totalorder %s2025_s14, %s2021_s13 }
   0xb   : > { %s2512_s21 = smov (%p38_p0, %s36_s21), 0  ;;  %p237_p5 = scmp.eq.s32.totalorder %s1658_s20, 1 }
   0xc   : > { %p2148_p4 = por %p231_p2, %p230_p1  ;;  %s215_s24 = ssub.s32 %s2037_s17, %s2512_s21 }
   0xd   : > { %p1661_p6 = scmp.ge.s32.totalorder %s2041_s18, 1  ;;  %p218_p7 = scmp.eq.s32.totalorder %s215_s24, 0 }
   0xe   : > { %p2155_p8 = por %p237_p5, %p236_p3  ;;  %p342_p9 = scmp.lt.s32.totalorder %s2041_s18, 3 }
   0xf   : > { %s2161_s26 = scalar_select %p218_p7, %s2029_s15, %s220_s22  }
  0x10   : > { %p343_p10 = pnand %p1661_p6, %p342_p9 }
  0x11   : > { %p396_p11 = scmp.lt.s32.totalorder (!%p343_p10), %s2033_s16, 1  ;;  %vm420_vm0 = vcmask (!%p343_p10), 261120   ;;  %s2503_s0 = sld [smem:[#allocation7_spill]] (!%p343_p10)  ;;  %v2043_v10 = vmov (!%p343_p10), 0   ;;  %v435_v14 = vlaneseq (!%p343_p10)  ;;  %v2195_v18 = vld [vmem:[%s2494_s7] sm:$0x3f] (!%p343_p10) }
  0x12   : > { %346 = sbr.rel (%p343_p10) target bundleno = 4138 (0x102a), region = 52  ;;  %s2504_s1 = sld [smem:[#allocation8_spill]] (!%p343_p10)  ;;  %517 = vmatprep.mubr.bf16.mxu1 (!%p343_p10), %v2043_v10  ;;  %v2044_v27 = vmov (!%p343_p10), 0.0   ;;  %v2208_v28 = vld [vmem:[%s2489_s2] sm:$0x3] (!%p343_p10)  ;;  %vm2047_vm1 = vmmov (!%p343_p10), 0  }
  0x13   : > { %v2189_v16 = vshrl.u32 (!%p343_p10), %v435_v14, 7  ;;  %1759 = vmatprep.subr.bf16.mxu0 (!%p343_p10), %v2044_v27  ;;  %s2045_s22 = smov (!%p343_p10), 64   ;;  %s2046_s24 = smov (!%p343_p10), 96   ;;  %1761 = vmatprep.mubr.msk.bf16.mxu0 (!%p343_p10), %vm2047_vm1, %v2044_v27  ;;  %vm560_vm2 = vcmask (!%p343_p10), 257024   ;;  %vm575_vm3 = vcmask (!%p343_p10), 64512   ;;  %vm645_vm4 = vcmask (!%p343_p10), 1043456  }
  0x14   : > { %v2238_v45 = vand.u32 (!%p343_p10), 127, %v435_v14  ;;  %s2049_s29 = smov (!%p343_p10), 112   ;;  %s2050_s30 = smov (!%p343_p10), 104  }
  0x15   : > { %v437_v17 = vsub.s32 (!%p343_p10), 0, %v2189_v16  ;;  %v442_v19 = vsub.s32 (!%p343_p10), 1, %v2189_v16  ;;  %s2498_s12 = smov (!%p343_p10), 32  }
  0x16   : > { %vm624_vm5 = vcmp.ge.s32.totalorder (!%p343_p10), %v2189_v16, %v2238_v45 }
  0x17   : > { %v438_v20 = vrot.slane (!%p343_p10), %v2195_v18, %v437_v17  ;;  %v443_v23 = vrot.slane (!%p343_p10), %v2195_v18, %v442_v19  ;;  %v455_v29 = vrot.slane (!%p343_p10), %v2208_v28, %v437_v17 }
  0x18   : > { %v1905_v7 = vld [vmem:[%s2504_s1 + $0x4] ss:$8 sps:$4 sm:$0xff] (!%p343_p10)   ;;  %v1907_v8 = vld [vmem:[%s2504_s1] ss:$8 sps:$4 sm:$0xff] (!%p343_p10)   ;;  %v1908_v9 = vld [vmem:[%s2504_s1 + $0x14] ss:$8 sps:$4 sm:$0xff] (!%p343_p10)  }
  0x19   : > { %s397_s27 = scalar_select %p396_p11, %s2033_s16, 1  ;;  %485 = vmatprep.subr.bf16.mxu1 %v1905_v7  ;;  %v1910_v11 = vld [vmem:[%s2504_s1 + $0x10] ss:$8 sps:$4 sm:$0xff]  }
  0x1a   : > { %486 = vmatpush1.bf16.msra.mxu1 %v1907_v8 }
  0x1b   : > { %s2165_s28 = sshll.u32 %s397_s27, 3  ;;  %487 = vmatprep.subr.bf16.mxu1 %v1908_v9  ;;  %s2048_s27 = smov 120  }
  0x1c   : > { %s402_s11 = scalar_lea.vmem %s2503_s0, %s2165_s28 }
  0x1d   : > { %v2171_v0 = vld [vmem:[%s402_s11] sm:$0xff] }
  0x1e   : > { %v421_v1 = vsel %vm420_vm0, %v2171_v0, 0.0  ;;  %488 = vmatpush1.bf16.msra.mxu1 %v1910_v11 }
  0x1f   : > { %422 = vadd.xlane.f32.xlu0 %v421_v1  ;;  %1741 = vmatprep.subr.bf16.mxu1 %v2044_v27 }
  0xac   : > { %v423_v2 = vpop.xlane.xlu0 %422 }
  0xad   : > { %v425_v3 = vmul.f32 0.03125, %v423_v2 }
  0xaf   : > { %v426_v4 = vsub.f32 %v2171_v0, %v425_v3 }
  0xb1   : > { %v427_v5 = vmul.f32 %v426_v4, %v426_v4 }
  0xb3   : > { %v428_v6 = vsel %vm420_vm0, %v427_v5, 0.0 }
  0xb4   : > { %429 = vadd.xlane.f32.xlu0 %v428_v6 }
 0x141   : > { %v430_v12 = vpop.xlane.xlu0 %429 }
 0x142   : > { %v431_v13 = vmul.f32 0.03125, %v430_v12 }
 0x144   : > { %v432_v15 = vadd.f32 1e-05, %v431_v13 }
 0x146   : > { %1923 = vrsqrt.f32 %v432_v15 }
 0x150   : > { %v1924_v21 = vpop.eup %1923 }
 0x151   : > { %v434_v22 = vmul.f32 %v1924_v21, %v426_v4 }
 0x153   : > { %v439_v24 = vmul.f32 %v438_v20, %v434_v22 }
 0x155   : > { %v444_v25 = vadd.f32 %v443_v23, %v439_v24 }
 0x157   : > { %v445_v26 = vpack.c.bf16 %v444_v25, %v444_v25 }
 0x159   : > { %1670 = vmatmul.mubr.msk.bf16.vlgmr.msra.gmra.mrb[0].mxu1 %vm420_vm0, %v445_v26 }
 0x15a   : > { %1743 = vmatprep.mubr.msk.bf16.mxu1 %vm2047_vm1, %v2044_v27 }
 0x22c   : > { %v519_v30 = vpop.f32.mrb[0].mxu1 }
 0x22d   : > { %v2211_v31 = vadd.f32 %v519_v30, %v455_v29  ;;  %v2213_v32 = vpop.f32.mrb[1].mxu1  ;;  %v693_v29 = vld [vmem:[%s2490_s3] sm:$0xf] }
 0x22e   : > { %v523_v33 = vpop.f32.mrb[2].mxu1  ;;  %v871_v30 = vsel %vm645_vm4, %v693_v29, 0 }
 0x22f   : > { %v524_v34 = vpop.f32.mrb[3].mxu1  ;;  %v1704_v35 = vpack.c.bf16 %v2211_v31, %v2211_v31  ;;  %v526_v41 = vmul.f32 0.35355338, %v2211_v31  ;;  %v820_v33 = vld [vmem:[%s2490_s3 + $0x4] sm:$0xf] }
 0x230   : > { %v825_v34 = vsel %vm645_vm4, %v820_v33, 0 }
 0x231   : > { %562 = vrot.lane.b32.xlu0 %v1704_v35, %s2045_s22  ;;  %553 = vrot.lane.b32.xlu1 %v1704_v35, %s2046_s24  ;;  %v2229_v42 = vpack.c.bf16 %v526_v41, %v526_v41 }
 0x2a3   : > { %v563_v36 = vpop.permute.xlu0 %562  ;;  %v554_v37 = vpop.permute.xlu1 %553 }
 0x2a4   : > { %567 = vst.msk [vmem:[#allocation3] sm:$0xf] %vm560_vm2, %v563_v36  ;;  %561 = vst.msk [vmem:[#allocation2] sm:$0xf] %vm560_vm2, %v554_v37 }
 0x2ab   : > { %v573_v38 = vld [vmem:[#allocation2] sm:$0xf]  ;;  %v574_v43 = vld [vmem:[#allocation3] sm:$0xf] }
 0x2ac   : > { %v580_v39 = vsel %vm575_vm3, %v573_v38, 0  ;;  %v2224_v40 = vcombine.low %v573_v38, %v573_v38  ;;  %v647_v44 = vsel %vm645_vm4, %v574_v43, 0  ;;  %v2246_v52 = vcombine.low %v574_v43, %v574_v43 }
 0x2ad   : > { %1742 = vmatpush3.bf16.xpose.msra.mxu1 %v580_v39 }
 0x2ae   : > { %700 = vrot.lane.b32.xlu0 %v2224_v40, %s2048_s27  ;;  %1747 = vmatprep.subr.bf16.mxu1 %v2044_v27 }
 0x2b2   : > { %695 = vrot.lane.b32.xlu0 %v2229_v42, %s2048_s27 }
 0x2b4   : > { %1744 = vmatmul.mubr.msk.bf16.vlgmr.msra.gmra.mrb[4].mxu1 %vm575_vm3, %v2229_v42 }
 0x2b5   : > { %1748 = vmatpush3.bf16.msra.mxu1 %v647_v44  ;;  %1749 = vmatprep.mubr.msk.bf16.mxu1 %vm2047_vm1, %v2044_v27 }
 0x2b6   : > { %1753 = vmatprep.subr.bf16.mxu1 %v2044_v27 }
 0x320   : > { %v701_v60 = vpop.permute.xlu0 %700 }
 0x321   : > { %v706_v62 = vsel %vm575_vm3, %v701_v60, 0 }
 0x324   : > { %v696_v63 = vpop.permute.xlu0 %695 }
 0x387   : > { %v616_v46 = vpop.f32.mrb[4].mxu1 }
 0x388   : > { %v625_v47 = vsel %vm624_vm5, %v616_v46, -1e+30  ;;  %v1745_v48 = vpop.f32.mrb[5].mxu1 }
 0x389   : > { %v619_v49 = vpop.f32.mrb[6].mxu1  ;;  %v626_v50 = vsel %vm575_vm3, %v625_v47, -inf }
 0x38a   : > { %627 = vmax.xlane.f32.xlu1 %v626_v50  ;;  %v1746_v51 = vpop.f32.mrb[7].mxu1 }
 0x39b   : > { %768 = vrot.lane.b32.xlu1 %v2246_v52, %s2048_s27  ;;  %s416_s27 = scalar_lea.vmem %s2497_s10, %s2165_s28 }
 0x417   : > { %v628_v53 = vpop.xlane.xlu1 %627 }
 0x418   : > { %v629_v54 = vmax.f32 %v628_v53, -1e+30 }
 0x41a   : > { %v633_v55 = vsub.f32 %v625_v47, %v629_v54  ;;  %v630_v1 = vsub.f32 -1e+30, %v629_v54 }
 0x41b   : > { %v769_v56 = vpop.permute.xlu1 %768 }
 0x41c   : > { %v634_v57 = vmul.f32 1.442695, %v633_v55  ;;  %v774_v58 = vsel %vm645_vm4, %v769_v56, 0  ;;  %v631_v2 = vmul.f32 1.442695, %v630_v1 }
 0x41d   : > { %1760 = vmatpush3.bf16.msra.mxu0 %v774_v58 }
 0x41e   : > { %1771 = vmatprep.subr.bf16.mxu0 %v2044_v27  ;;  %1925 = vpow2.f32 %v634_v57 }
 0x41f   : > { %1927 = vpow2.f32 %v631_v2 }
 0x428   : > { %v1926_v59 = vpop.eup %1925 }
 0x429   : > { %v641_v61 = vpack.c.bf16 %v1926_v59, %v1926_v59  ;;  %v1928_v3 = vpop.eup %1927  ;;  %v637_v26 = vsel %vm575_vm3, %v1926_v59, 0.0 }
 0x42a   : > { %v636_v4 = vmul.f32 0.0, %v1928_v3 }
 0x42b   : > { %1750 = vmatmul.mubr.msk.bf16.vlgmr.msra.gmra.mrb[8].mxu1 %vm575_vm3, %v641_v61 }
 0x42c   : > { %1754 = vmatpush3.bf16.xpose.msra.mxu1 %v706_v62  ;;  %1755 = vmatprep.mubr.msk.bf16.mxu1 %vm2047_vm1, %v2044_v27 }
 0x42d   : > { %1765 = vmatprep.subr.bf16.mxu1 %v2044_v27 }
 0x433   : > { %1756 = vmatmul.mubr.msk.bf16.vlgmr.msra.gmra.mrb[12].mxu1 %vm575_vm3, %v696_v63 }
 0x434   : > { %1767 = vmatprep.mubr.msk.bf16.mxu1 %vm2047_vm1, %v2044_v27  ;;  %1766 = vmatpush3.bf16.msra.mxu1 %v825_v34 }
 0x435   : > { %1777 = vmatprep.subr.bf16.mxu1 %v2044_v27 }
 0x4fe   : > { %v683_v5 = vpop.f32.mrb[8].mxu1 }
 0x4ff   : > { %v689_v6 = vadd.f32 %v683_v5, %v636_v4  ;;  %v1751_v7 = vpop.f32.mrb[9].mxu1 }
 0x500   : > { %v686_v8 = vpop.f32.mrb[10].mxu1 }
 0x501   : > { %v1752_v9 = vpop.f32.mrb[11].mxu1 }
 0x506   : > { %v742_v10 = vpop.f32.mrb[12].mxu1 }
 0x507   : > { %v748_v11 = vsel %vm624_vm5, %v742_v10, -1e+30  ;;  %v1757_v12 = vpop.f32.mrb[13].mxu1 }
 0x508   : > { %v745_v13 = vpop.f32.mrb[14].mxu1  ;;  %v749_v14 = vsel %vm575_vm3, %v748_v11, -inf }
 0x509   : > { %750 = vmax.xlane.f32.xlu0 %v749_v14  ;;  %v1758_v15 = vpop.f32.mrb[15].mxu1 }
 0x51f   : > { %915 = vrot.lane.b32.xlu0 %v2224_v40, %s2049_s29 }
 0x523   : > { %913 = vrot.lane.b32.xlu0 %v2229_v42, %s2049_s29 }
 0x596   : > { %v751_v17 = vpop.xlane.xlu0 %750 }
 0x597   : > { %v752_v20 = vmax.f32 %v751_v17, -1e+30 }
 0x599   : > { %v756_v21 = vsub.f32 %v748_v11, %v752_v20  ;;  %v753_v43 = vsub.f32 -1e+30, %v752_v20 }
 0x59a   : > { %v916_v57 = vpop.permute.xlu0 %915 }
 0x59b   : > { %v757_v22 = vmul.f32 1.442695, %v756_v21  ;;  %v754_v44 = vmul.f32 1.442695, %v753_v43  ;;  %v921_v59 = vsel %vm575_vm3, %v916_v57, 0 }
 0x59d   : > { %1929 = vpow2.f32 %v757_v22 }
 0x59e   : > { %v914_v60 = vpop.permute.xlu0 %913 }
 0x5a7   : > { %v1930_v23 = vpop.eup %1929 }
 0x5a8   : > { %v760_v24 = vsel %vm575_vm3, %v1930_v23, 0.0  ;;  %v764_v25 = vpack.c.bf16 %v1930_v23, %v1930_v23 }
 0x5a9   : > { %761 = vadd.xlane.f32.xlu1 %v760_v24 }
 0x5aa   : > { %1762 = vmatmul.mubr.msk.bf16.vlgmr.msra.gmra.mrb[0].mxu0 %vm575_vm3, %v764_v25 }
 0x5ab   : > { %1773 = vmatprep.mubr.msk.bf16.mxu0 %vm2047_vm1, %v2044_v27  ;;  %1772 = vmatpush3.bf16.msra.mxu0 %v871_v30 }
 0x5ac   : > { %1783 = vmatprep.subr.bf16.mxu0 %v2044_v27 }
 0x5ad   : > { %638 = vadd.xlane.f32.xlu1 %v637_v26  ;;  %v1032_v26 = vld [vmem:[%s2490_s3 + $0x8] sm:$0xf] }
 0x5ae   : > { %v1037_v29 = vsel %vm645_vm4, %v1032_v26, 0 }
 0x5be   : > { %980 = vrot.lane.b32.xlu1 %v2246_v52, %s2049_s29  ;;  %s375_s29 = sand.u32 1, %s2025_s14  }
 0x5c2   : > { %1082 = vrot.lane.b32.xlu1 %v2224_v40, %s2050_s30 }
 0x5c6   : > { %1080 = vrot.lane.b32.xlu1 %v2229_v42, %s2050_s30 }
 0x636   : > { %v762_v35 = vpop.xlane.xlu1 %761 }
 0x63a   : > { %v639_v36 = vpop.xlane.xlu1 %638 }
 0x63b   : > { %v640_v37 = vadd.f32 %v639_v36, %v636_v4 }
 0x63d   : > { %1931 = vrcp.f32 %v640_v37 }
 0x63e   : > { %v981_v40 = vpop.permute.xlu1 %980  ;;  %1933 = vpow2.f32 %v754_v44 }
 0x63f   : > { %v986_v42 = vsel %vm645_vm4, %v981_v40, 0 }
 0x642   : > { %v1083_v21 = vpop.permute.xlu1 %1082 }
 0x643   : > { %v1088_v24 = vsel %vm575_vm3, %v1083_v21, 0 }
 0x646   : > { %v1081_v25 = vpop.permute.xlu1 %1080 }
 0x647   : > { %v1932_v38 = vpop.eup %1931 }
 0x648   : > { %v691_v39 = vmul.f32 %v1932_v38, %v689_v6  ;;  %v1934_v46 = vpop.eup %1933 }
 0x649   : > { %v759_v47 = vmul.f32 0.0, %v1934_v46 }
 0x64a   : > { %v692_v41 = vpack.c.bf16 %v691_v39, %v691_v39 }
 0x64b   : > { %v763_v48 = vadd.f32 %v762_v35, %v759_v47 }
 0x64c   : > { %1774 = vmatmul.mubr.msk.bf16.vlgmr.msra.gmra.mrb[4].mxu0 %vm575_vm3, %v692_v41 }
 0x64d   : > { %1784 = vmatpush3.bf16.msra.mxu0 %v986_v42  ;;  %1785 = vmatprep.mubr.msk.bf16.mxu0 %vm2047_vm1, %v2044_v27  ;;  %1935 = vrcp.f32 %v763_v48 }
 0x64e   : > { %1795 = vmatprep.subr.bf16.mxu0 %v2044_v27 }
 0x657   : > { %v1936_v53 = vpop.eup %1935 }
 0x67d   : > { %v810_v49 = vpop.f32.mrb[0].mxu0 }
 0x67e   : > { %v816_v50 = vadd.f32 %v810_v49, %v759_v47  ;;  %v1763_v51 = vpop.f32.mrb[1].mxu0 }
 0x67f   : > { %v813_v54 = vpop.f32.mrb[2].mxu0 }
 0x680   : > { %v818_v55 = vmul.f32 %v1936_v53, %v816_v50  ;;  %v1764_v56 = vpop.f32.mrb[3].mxu0 }
 0x682   : > { %v819_v58 = vpack.c.bf16 %v818_v55, %v818_v55 }
 0x684   : > { %1768 = vmatmul.mubr.msk.bf16.vlgmr.msra.gmra.mrb[16].mxu1 %vm575_vm3, %v819_v58 }
 0x685   : > { %1778 = vmatpush3.bf16.xpose.msra.mxu1 %v921_v59  ;;  %1779 = vmatprep.mubr.msk.bf16.mxu1 %vm2047_vm1, %v2044_v27 }
 0x686   : > { %1789 = vmatprep.subr.bf16.mxu1 %v2044_v27 }
 0x68c   : > { %1780 = vmatmul.mubr.msk.bf16.vlgmr.msra.gmra.mrb[20].mxu1 %vm575_vm3, %v914_v60 }
 0x68d   : > { %1791 = vmatprep.mubr.msk.bf16.mxu1 %vm2047_vm1, %v2044_v27  ;;  %1790 = vmatpush3.bf16.msra.mxu1 %v1037_v29  ;;  %v1249_v29 = vsub.s32 4, %v2189_v16 }
 0x68e   : > { %1801 = vmatprep.subr.bf16.mxu1 %v2044_v27 }
 0x71f   : > { %v907_v61 = vpop.f32.mrb[4].mxu0 }
 0x720   : > { %v1775_v62 = vpop.f32.mrb[5].mxu0 }
 0x721   : > { %v910_v63 = vpop.f32.mrb[6].mxu0 }
 0x722   : > { %v1776_v1 = vpop.f32.mrb[7].mxu0 }
 0x757   : > { %v861_v2 = vpop.f32.mrb[16].mxu1 }
 0x758   : > { %v2298_v3 = vadd.f32 %v907_v61, %v861_v2  ;;  %v1769_v4 = vpop.f32.mrb[17].mxu1 }
 0x759   : > { %v864_v5 = vpop.f32.mrb[18].mxu1  ;;  %v1199_v4 = vld [vmem:[%s2490_s3 + $0xc] sm:$0xf] }
 0x75a   : > { %v1770_v6 = vpop.f32.mrb[19].mxu1  ;;  %v1204_v5 = vsel %vm645_vm4, %v1199_v4, 0 }
 0x75f   : > { %v957_v7 = vpop.f32.mrb[20].mxu1 }
 0x760   : > { %v963_v8 = vsel %vm624_vm5, %v957_v7, -1e+30  ;;  %v1781_v9 = vpop.f32.mrb[21].mxu1 }
 0x761   : > { %v960_v10 = vpop.f32.mrb[22].mxu1  ;;  %v964_v11 = vsel %vm575_vm3, %v963_v8, -inf }
 0x762   : > { %965 = vmax.xlane.f32.xlu0 %v964_v11  ;;  %v1782_v12 = vpop.f32.mrb[23].mxu1 }
 0x7ef   : > { %v966_v13 = vpop.xlane.xlu0 %965 }
 0x7f0   : > { %v967_v14 = vmax.f32 %v966_v13, -1e+30 }
 0x7f2   : > { %v971_v15 = vsub.f32 %v963_v8, %v967_v14  ;;  %v968_v30 = vsub.f32 -1e+30, %v967_v14 }
 0x7f4   : > { %v972_v17 = vmul.f32 1.442695, %v971_v15  ;;  %v969_v33 = vmul.f32 1.442695, %v968_v30  ;;  %v1250_v30 = vrot.slane %v2195_v18, %v1249_v29 }
 0x7f6   : > { %1937 = vpow2.f32 %v972_v17 }
 0x7f7   : > { %1939 = vpow2.f32 %v969_v33 }
 0x800   : > { %v1938_v20 = vpop.eup %1937 }
 0x801   : > { %v975_v22 = vsel %vm575_vm3, %v1938_v20, 0.0  ;;  %v979_v23 = vpack.c.bf16 %v1938_v20, %v1938_v20  ;;  %v1940_v34 = vpop.eup %1939 }
 0x802   : > { %976 = vadd.xlane.f32.xlu1 %v975_v22  ;;  %v974_v36 = vmul.f32 0.0, %v1940_v34  ;;  %v459_v22 = vrot.slane %v2208_v28, %v442_v19 }
 0x803   : > { %1786 = vmatmul.mubr.msk.bf16.vlgmr.msra.gmra.mrb[8].mxu0 %vm575_vm3, %v979_v23 }
 0x804   : > { %1796 = vmatpush3.bf16.xpose.msra.mxu0 %v1088_v24  ;;  %1797 = vmatprep.mubr.msk.bf16.mxu0 %vm2047_vm1, %v2044_v27  ;;  %v522_v23 = vadd.f32 %v2213_v32, %v459_v22  ;;  %v1671_v32 = vmul.f32 -1.442695, %v2211_v31 }
 0x805   : > { %1807 = vmatprep.subr.bf16.mxu0 %v2044_v27 }
 0x806   : > { %v1672_v24 = vmul.f32 -1.442695, %v522_v23 }
 0x80b   : > { %1798 = vmatmul.mubr.msk.bf16.vlgmr.msra.gmra.mrb[12].mxu0 %vm575_vm3, %v1081_v25 }
 0x80c   : > { %1809 = vmatprep.mubr.msk.bf16.mxu0 %vm2047_vm1, %v2044_v27  ;;  %1808 = vmatpush3.bf16.msra.mxu0 %v1204_v5 }
 0x80d   : > { %1821 = vmatprep.subr.bf16.mxu0 %v2044_v27 }
 0x88f   : > { %v977_v35 = vpop.xlane.xlu1 %976 }
 0x890   : > { %v978_v37 = vadd.f32 %v977_v35, %v974_v36 }
 0x892   : > { %1941 = vrcp.f32 %v978_v37 }
 0x89c   : > { %v1942_v41 = vpop.eup %1941 }
 0x8d6   : > { %v1022_v38 = vpop.f32.mrb[8].mxu0 }
 0x8d7   : > { %v1028_v39 = vadd.f32 %v1022_v38, %v974_v36  ;;  %v1787_v40 = vpop.f32.mrb[9].mxu0 }
 0x8d8   : > { %v1025_v42 = vpop.f32.mrb[10].mxu0 }
 0x8d9   : > { %v1030_v43 = vmul.f32 %v1942_v41, %v1028_v39  ;;  %v1788_v44 = vpop.f32.mrb[11].mxu0 }
 0x8db   : > { %v1031_v46 = vpack.c.bf16 %v1030_v43, %v1030_v43 }
 0x8dd   : > { %1792 = vmatmul.mubr.msk.bf16.vlgmr.msra.gmra.mrb[24].mxu1 %vm575_vm3, %v1031_v46 }
 0x8de   : > { %v1124_v47 = vpop.f32.mrb[12].mxu0  ;;  %1803 = vmatprep.mubr.msk.bf16.mxu1 %vm2047_vm1, %v2044_v27 }
 0x8df   : > { %v1130_v48 = vsel %vm624_vm5, %v1124_v47, -1e+30  ;;  %v1799_v49 = vpop.f32.mrb[13].mxu0 }
 0x8e0   : > { %v1127_v50 = vpop.f32.mrb[14].mxu0  ;;  %v1131_v51 = vsel %vm575_vm3, %v1130_v48, -inf }
 0x8e1   : > { %1132 = vmax.xlane.f32.xlu0 %v1131_v51  ;;  %v1800_v53 = vpop.f32.mrb[15].mxu0 }
 0x8f7   : > { %1147 = vrot.lane.b32.xlu0 %v2246_v52, %s2050_s30  ;;  %s1662_s30 = sshll.u32 %s375_s29, 3 }
 0x8f8   : > { %s377_s11 = scalar_lea.vmem [#allocation4], %s1662_s30 }
 0x96e   : > { %v1133_v54 = vpop.xlane.xlu0 %1132 }
 0x96f   : > { %v1134_v55 = vmax.f32 %v1133_v54, -1e+30 }
 0x971   : > { %v1138_v56 = vsub.f32 %v1130_v48, %v1134_v55  ;;  %v1135_v6 = vsub.f32 -1e+30, %v1134_v55 }
 0x972   : > { %v1148_v57 = vpop.permute.xlu0 %1147 }
 0x973   : > { %v1139_v58 = vmul.f32 1.442695, %v1138_v56  ;;  %v1153_v59 = vsel %vm645_vm4, %v1148_v57, 0  ;;  %v1136_v7 = vmul.f32 1.442695, %v1135_v6  ;;  %v1913_v56 = vld [vmem:[%s2491_s4] sm:$0xff]  }
 0x974   : > { %1802 = vmatpush3.bf16.msra.mxu1 %v1153_v59  ;;  %v1914_v57 = vld [vmem:[%s2491_s4 + $0x8] sm:$0xff]  }
 0x975   : > { %1813 = vmatprep.subr.bf16.mxu1 %v2044_v27  ;;  %1943 = vpow2.f32 %v1139_v58  ;;  %v1915_v58 = vld [vmem:[%s2493_s6] sm:$0xff]  }
 0x976   : > { %1945 = vpow2.f32 %v1136_v7  ;;  %v1916_v7 = vld [vmem:[%s2493_s6 + $0x8] sm:$0xff]  }
 0x97f   : > { %v1944_v45 = vpop.eup %1943 }
 0x980   : > { %v1142_v60 = vsel %vm575_vm3, %v1944_v45, 0.0  ;;  %v1146_v61 = vpack.c.bf16 %v1944_v45, %v1944_v45  ;;  %v1946_v8 = vpop.eup %1945 }
 0x981   : > { %1143 = vadd.xlane.f32.xlu0 %v1142_v60  ;;  %v1141_v10 = vmul.f32 0.0, %v1946_v8  ;;  %v1917_v8 = vld [vmem:[%s2493_s6 + $0x10] sm:$0xff]  }
 0x982   : > { %1804 = vmatmul.mubr.msk.bf16.vlgmr.msra.gmra.mrb[28].mxu1 %vm575_vm3, %v1146_v61  ;;  %v1280_v61 = vsub.s32 2, %v2189_v16 }
 0x983   : > { %1817 = vmatprep.mubr.msk.bf16.mxu1 %vm2047_vm1, %v2044_v27  ;;  %1814 = vmatpush3.bf16.msra.mxu1 %v1913_v56 }
 0x984   : > { %1815 = vmatprep.subr.bf16.mxu1 %v2044_v27 }
 0x987   : > { %1816 = vmatpush3.bf16.msra.mxu1 %v1914_v57 }
 0x9b0   : > { %v1073_v52 = vpop.f32.mrb[24].mxu1 }
 0x9b1   : > { %v1079_v62 = vadd.f32 %v1073_v52, %v2298_v3  ;;  %v1793_v63 = vpop.f32.mrb[25].mxu1  ;;  %v1285_v52 = vsub.s32 3, %v2189_v16 }
 0x9b2   : > { %v1076_v1 = vpop.f32.mrb[26].mxu1 }
 0x9b3   : > { %v1794_v2 = vpop.f32.mrb[27].mxu1 }
 0x9b4   : > { %v1286_v2 = vrot.slane %v2195_v18, %v1285_v52 }
 0xa0e   : > { %v1144_v9 = vpop.xlane.xlu0 %1143 }
 0xa0f   : > { %v1145_v11 = vadd.f32 %v1144_v9, %v1141_v10  ;;  %v1918_v9 = vld [vmem:[%s2493_s6 + $0x18] sm:$0xff]  }
 0xa11   : > { %1947 = vrcp.f32 %v1145_v11  ;;  %v1920_v11 = vld [vmem:[%s2493_s6 + $0x28] sm:$0xff]  }
 0xa12   : > { %1949 = vpow2.f32 %v1672_v24 }
 0xa1b   : > { %v1948_v14 = vpop.eup %1947 }
 0xa1c   : > { %v1950_v25 = vpop.eup %1949 }
 0xa1d   : > { %v536_v26 = vadd.f32 1.0, %v1950_v25 }
 0xa1f   : > { %1951 = vrcp.f32 %v536_v26 }
 0xa29   : > { %v1952_v39 = vpop.eup %1951 }
 0xa55   : > { %v1189_v3 = vpop.f32.mrb[28].mxu1 }
 0xa56   : > { %v1195_v12 = vadd.f32 %v1189_v3, %v1141_v10  ;;  %v1805_v13 = vpop.f32.mrb[29].mxu1  ;;  %v1919_v10 = vld [vmem:[%s2493_s6 + $0x20] sm:$0xff]   ;;  %v1921_v3 = vld [vmem:[%s2493_s6 + $0x30] sm:$0xff]  }
 0xa57   : > { %v1192_v15 = vpop.f32.mrb[30].mxu1  ;;  %v1688_v13 = vld [vmem:[%s2492_s5] ss:$0 sm:$0xff] }
 0xa58   : > { %v1197_v17 = vmul.f32 %v1948_v14, %v1195_v12  ;;  %v1806_v20 = vpop.f32.mrb[31].mxu1  ;;  %v1922_v12 = vld [vmem:[%s2493_s6 + $0x38] sm:$0xff]  }
 0xa5a   : > { %v1198_v21 = vpack.c.bf16 %v1197_v17, %v1197_v17 }
 0xa5c   : > { %1810 = vmatmul.mubr.msk.bf16.vlgmr.msra.gmra.mrb[16].mxu0 %vm575_vm3, %v1198_v21 }
 0xa5d   : > { %1837 = vmatprep.mubr.msk.bf16.mxu0 %vm2047_vm1, %v2044_v27  ;;  %1822 = vmatpush3.bf16.msra.mxu0 %v1915_v58 }
 0xa5e   : > { %1823 = vmatprep.subr.bf16.mxu0 %v2044_v27 }
 0xa61   : > { %1824 = vmatpush3.bf16.msra.mxu0 %v1916_v7 }
 0xa62   : > { %1825 = vmatprep.subr.bf16.mxu0 %v2044_v27 }
 0xa65   : > { %1826 = vmatpush3.bf16.msra.mxu0 %v1917_v8 }
 0xa66   : > { %1827 = vmatprep.subr.bf16.mxu0 %v2044_v27 }
 0xa69   : > { %1828 = vmatpush3.bf16.msra.mxu0 %v1918_v9 }
 0xa6a   : > { %1829 = vmatprep.subr.bf16.mxu0 %v2044_v27 }
 0xa6d   : > { %1830 = vmatpush3.bf16.msra.mxu0 %v1919_v10 }
 0xa6e   : > { %1831 = vmatprep.subr.bf16.mxu0 %v2044_v27 }
 0xa71   : > { %1832 = vmatpush3.bf16.msra.mxu0 %v1920_v11 }
 0xa72   : > { %1833 = vmatprep.subr.bf16.mxu0 %v2044_v27 }
 0xa75   : > { %1834 = vmatpush3.bf16.msra.mxu0 %v1921_v3 }
 0xa76   : > { %1835 = vmatprep.subr.bf16.mxu0 %v2044_v27 }
 0xa79   : > { %1836 = vmatpush3.bf16.msra.mxu0 %v1922_v12 }
 0xb2f   : > { %v1240_v33 = vpop.f32.mrb[16].mxu0 }
 0xb30   : > { %v1246_v34 = vadd.f32 %v1240_v33, %v1079_v62  ;;  %v1811_v35 = vpop.f32.mrb[17].mxu0  ;;  %v1281_v62 = vrot.slane %v2195_v18, %v1280_v61 }
 0xb31   : > { %v1243_v36 = vpop.f32.mrb[18].mxu0  ;;  %v1383_v35 = vsub.s32 5, %v2189_v16 }
 0xb32   : > { %v1251_v37 = vadd.f32 %v1250_v30, %v1246_v34  ;;  %v1812_v38 = vpop.f32.mrb[19].mxu0 }
 0xb33   : > { %v1384_v36 = vrot.slane %v2195_v18, %v1383_v35 }
 0xb34   : > { %v1252_v40 = vmul.f32 %v1952_v39, %v1251_v37 }
 0xb36   : > { %1953 = vtanh.f32 %v1252_v40 }
 0xb37   : > { %1955 = vpow2.f32 %v1671_v32 }
 0xb40   : > { %v1954_v19 = vpop.eup %1953 }
 0xb41   : > { %v1254_v28 = vsub.f32 %v1954_v19, %v2171_v0  ;;  %v1956_v41 = vpop.eup %1955 }
 0xb42   : > { %v530_v42 = vadd.f32 1.0, %v1956_v41 }
 0xb43   : > { %1256 = vrot.lane.b32.xlu1 %v1254_v28, %s2046_s24 }
 0xb44   : > { %1957 = vrcp.f32 %v530_v42 }
 0xb4e   : > { %v2351_v43 = vpop.eup %1957 }
 0xbb5   : > { %v1257_v44 = vpop.permute.xlu1 %1256 }
 0xbb6   : > { %v1259_v46 = vmul.f32 %v2351_v43, %v1257_v44 }
 0xbb8   : > { %1261 = vrot.lane.b32.xlu1 %v1259_v46, %s2498_s12  ;;  %s1514_s12 = sshll.u32 %s377_s11, 4  ;;  %s2431_s12 = int_to_ptr.vmem [resolvable:$true] %s1514_s12 }
 0xbb9   : > { %s1963_s30 = scalar_lea.vmem %s2431_s12, 128 }
 0xbba   : > { %p1964_p12 = scmp.ne.s32.totalorder %s2431_s12, %s1963_s30 }
 0xbbc   : > { %p1965_p13 = pnand %p1964_p12, %p2148_p4 }
 0xbbe   : > { %p1966_p0 = pneg %p1965_p13 }
 0xc2a   : > { %v1262_v47 = vpop.permute.xlu1 %1261 }
 0xc2b   : > { %v2356_v48 = vadd.f32 %v1262_v47, %v2171_v0 }
 0xc2d   : > { %v1265_v49 = vsel %vm420_vm0, %v2356_v48, 0.0 }
 0xc2e   : > { %1266 = vadd.xlane.f32.xlu1 %v1265_v49 }
 0xc3f   : > { %544 = vrot.lane.b32.xlu1 %v2211_v31, %s2045_s22  ;;  %s1701_s22 = sshll.u32 %s2033_s16, 7  ;;  %s1486_s16 = scalar_lea.sflag [#allocation5], %s375_s29 }
 0xc40   : > { %s2429_s0 = scalar_lea.hbm %s2495_s8, %s1701_s22  ;;  %s2052_s22 = smov [#allocation4]  }
 0xc41   : > { %s1967_s19 = sshll.u32 %s2052_s22, 4  ;;  %s1968_s19 = int_to_ptr.vmem [resolvable:$false] %s1967_s19 }
 0xc42   : > { %s1969_s20 = scalar_lea.vmem %s1968_s19, 256  ;;  %p1970_p1 = scmp.lt.s32.totalorder %s2431_s12, %s1968_s19 }
 0xc43   : > { %p1971_p2 = scmp.lt.s32.totalorder %s1969_s20, %s1963_s30 }
 0xc45   : > { %p1972_p3 = por %p1971_p2, %p1970_p1 }
 0xc47   : > { %p1973_p5 = pnand %p1972_p3, %p1966_p0 }
 0xcbb   : > { %v1267_v50 = vpop.xlane.xlu1 %1266 }
 0xcbc   : > { %v1268_v51 = vmul.f32 0.03125, %v1267_v50 }
 0xcbe   : > { %v1269_v53 = vsub.f32 %v2356_v48, %v1268_v51 }
 0xcbf   : > { %v545_v54 = vpop.permute.xlu1 %544 }
 0xcc0   : > { %547 = vst.msk [vmem:[%s416_s27] sm:$0xff] %vm420_vm0, %v545_v54  ;;  %v1270_v0 = vmul.f32 %v1269_v53, %v1269_v53  ;;  %s2505_s27 = smov 32  }
 0xcc2   : > { %v1271_v55 = vsel %vm420_vm0, %v1270_v0, 0.0 }
 0xcc3   : > { %1272 = vadd.xlane.f32.xlu0 %v1271_v55 }
 0xd50   : > { %v1273_v59 = vpop.xlane.xlu0 %1272 }
 0xd51   : > { %v1274_v45 = vmul.f32 0.03125, %v1273_v59 }
 0xd53   : > { %v1275_v60 = vadd.f32 1e-05, %v1274_v45 }
 0xd55   : > { %1959 = vrsqrt.f32 %v1275_v60 }
 0xd5f   : > { %v1960_v63 = vpop.eup %1959 }
 0xd60   : > { %v1277_v1 = vmul.f32 %v1960_v63, %v1269_v53 }
 0xd62   : > { %v1282_v4 = vmul.f32 %v1281_v62, %v1277_v1 }
 0xd64   : > { %v1287_v5 = vadd.f32 %v1286_v2, %v1282_v4 }
 0xd66   : > { %v1288_v6 = vpack.c.bf16 %v1287_v5, %v1287_v5 }
 0xd68   : > { %1818 = vmatmul.mubr.msk.bf16.vlgmr.msra.gmra.mrb[32].mxu1 %vm420_vm0, %v1288_v6 }
 0xe3b   : > { %v1349_v14 = vpop.f32.mrb[32].mxu1 }
 0xe3c   : > { %v1350_v15 = vadd.f32 %v1688_v13, %v1349_v14  ;;  %v1819_v17 = vpop.f32.mrb[33].mxu1 }
 0xe3d   : > { %v1352_v20 = vpop.f32.mrb[34].mxu1 }
 0xe3e   : > { %v1356_v21 = vmul.f32 0.044715, %v1350_v15  ;;  %v1820_v22 = vpop.f32.mrb[35].mxu1  ;;  %v1355_v30 = vmul.f32 0.5, %v1350_v15 }
 0xe40   : > { %v1357_v23 = vmul.f32 %v1356_v21, %v1350_v15 }
 0xe42   : > { %v1358_v24 = vmul.f32 %v1357_v23, %v1350_v15 }
 0xe44   : > { %v1359_v25 = vadd.f32 %v1358_v24, %v1350_v15 }
 0xe46   : > { %v1360_v26 = vmul.f32 0.7978846, %v1359_v25 }
 0xe48   : > { %1961 = vtanh.f32 %v1360_v26 }
 0xe52   : > { %v1962_v29 = vpop.eup %1961 }
 0xe53   : > { %v1362_v33 = vadd.f32 1.0, %v1962_v29 }
 0xe55   : > { %v1363_v27 = vmul.f32 %v1362_v33, %v1355_v30 }
 0xe57   : > { %v1364_v34 = vpack.c.bf16 %v1363_v27, %v1363_v27 }
 0xe59   : > { %1838 = vmatmul.mubr.bf16.vlgmr.msra.gmra.mrb[20].mxu0 %v1364_v34 }
 0xf2c   : > { %v1467_v37 = vpop.f32.mrb[20].mxu0 }
 0xf2d   : > { %v1468_v38 = vadd.f32 %v1467_v37, %v1384_v36  ;;  %v1839_v39 = vpop.f32.mrb[21].mxu0 }
 0xf2e   : > { %v1470_v40 = vpop.f32.mrb[22].mxu0 }
 0xf2f   : > { %v1473_v19 = vsub.f32 %v1468_v38, %v2356_v48  ;;  %v1840_v28 = vpop.f32.mrb[23].mxu0 }
 0xf31   : > { %1475 = vrot.lane.b32.xlu0 %v1473_v19, %s2046_s24 }
 0xfa3   : > { %v1476_v32 = vpop.permute.xlu0 %1475 }
 0xfa4   : > { %v1478_v41 = vmul.f32 %v2351_v43, %v1476_v32 }
 0xfa6   : > { %1480 = vrot.lane.b32.xlu0 %v1478_v41, %s2505_s27 }
 0xfaa   : > { %540 = vrot.lane.b32.xlu0 %v2211_v31, %s2046_s24  ;;  %s409_s24 = scalar_lea.vmem %s2496_s9, %s2165_s28 }
0x1018   : > { %v1481_v16 = vpop.permute.xlu0 %1480 }
0x1019   : > { %v1483_v18 = vadd.f32 %v1481_v16, %v2356_v48 }
0x101b   : > { %1484 = vst.msk [vmem:[%s377_s11] sm:$0xff] %vm420_vm0, %v1483_v18 }
0x101c   : > { %v541_v31 = vpop.permute.xlu0 %540 }
0x101d   : > { %1976 = shalt.err (!%p1973_p5)
}
0x101e   : > { %s1977_s1 = scalar_lea.hbm %s2429_s0, 128  ;;  %s1981_s27 = scalar_lea.hbm %s2495_s8, 256 }
0x101f   : > { %p1978_p6 = scmp.ne.s32.totalorder %s2429_s0, %s1977_s1  ;;  %p1982_p10 = scmp.lt.u32.totalorder %s2429_s0, %s2495_s8 }
0x1020   : > { %p1983_p11 = scmp.lt.u32.totalorder %s1981_s27, %s1977_s1  ;;  %p1985_p13 = scmp.lt.u32.totalorder %s1977_s1, %s2429_s0 }
0x1021   : > { %p1979_p7 = pnand %p1978_p6, %p2148_p4 }
0x1022   : > { %p1984_p12 = por %p1983_p11, %p1982_p10 }
0x1023   : > { %p1980_p9 = pneg %p1979_p7 }
0x1024   : > { %p1986_p0 = por %p1985_p13, %p1984_p12 }
0x1026   : > { %p1987_p1 = pnand %p1986_p0, %p1980_p9 }
0x1028   : > { %1990 = shalt.err (!%p1987_p1)
}
0x1029   : > { %1841 = dma.vmem_to_hbm [thread:$0]  (%p2148_p4), %s2431_s12, 128, %s2429_s0, %s1486_s16   ;;  %543 = vst.msk [vmem:[%s409_s24] sm:$0xff] %vm420_vm0, %v541_v31 }
0x102a PF: > { %p1847_p2 = scmp.ge.s32.totalorder %s2041_s18, 2  ;;  %s1532_s1 = sand.u32 1, %s2021_s13  }
0x102b   : > { %s1533_s29 = scalar_lea.sflag [#allocation5], %s1532_s1 }
0x102c   : > { %p1844_p3 = pnand %p1847_p2, %p2155_p8 }
0x102e   : > { %2016 = dma.done.wait (!%p1844_p3), %s1533_s29, 128  }
0x102f   : > { %2018 = vsyncadd (!%p1844_p3), %s1533_s29, 4294967168  ;;  %s24_s18 = sadd.s32 1, %s2041_s18   ;;  %s2506_s13 = smov %s2025_s14 }
0x1030   : > { %p21_p4 = scmp.ge.s32.totalorder %s24_s18, 4   ;;  %s2507_s14 = smov %s2029_s15 }
0x1031   : > { %s2508_s15 = smov %s2161_s26  ;;  %s2509_s16 = smov %s2037_s17 }
0x1032   : > { %s2510_s17 = smov %s2512_s21  ;;  %23 = sbr.rel (!%p21_p4) target bundleno = 7 (0x7), region = 113 }
0x1039   :  { %1558 = vsyncpa [#allocation5], 1 }
0x103a   :  { %1560 = vsyncpa [#allocation5 + $0x1], 1 }

</bundles_post_ra>
